<compile_context>
chip_gen: v7x
topology: tpu7x:2x2x1
jax: 0.10.0
libtpu: 0.0.40
codegen_flags: <defaults>
</compile_context>

<pallas_src>
import jax
import jax.numpy as jnp
from jax import lax
from jax.experimental import pallas as pl
from jax.experimental.pallas import tpu as pltpu

D_IN, D_H1, D_H2, D_OUT = 784, 512, 256, 1


def discriminator_kernel(x_ref, w1_ref, b1_ref, w2_ref, b2_ref, w3_ref, b3_ref,
                         o_ref):
    """One batch tile: x (tb, 784) -> validity row o (1, 1, tb).

    MXU operands are bf16; accumulation and all VPU math are f32.
    """
    x = x_ref[...].astype(jnp.bfloat16)                       # (tb, 784)

    # Layer 1: 784 -> 512, LeakyReLU(0.2)  (one vmul + vmax).
    h1 = jnp.dot(x, w1_ref[...], preferred_element_type=jnp.float32) + b1_ref[...]
    h1 = jnp.maximum(h1, 0.2 * h1)

    # Layer 2: 512 -> 256, LeakyReLU(0.2).
    h2 = jnp.dot(h1.astype(jnp.bfloat16), w2_ref[...],
                 preferred_element_type=jnp.float32) + b2_ref[...]
    h2 = jnp.maximum(h2, 0.2 * h2)

    # Layer 3: 256 -> 1, emitted lane-dense.  Contract both last dims:
    #   w3_row (1, 256) . h2 (tb, 256) -> (1, tb)
    # (same contraction pattern as q @ k^T), so the per-row logits land along
    # lanes and the store is one dense (1, tb) row instead of a (tb, 1)
    # column of masked partial stores.
    h3 = lax.dot_general(w3_ref[...], h2.astype(jnp.bfloat16),
                         dimension_numbers=(((1,), (1,)), ((), ())),
                         preferred_element_type=jnp.float32)   # (1, tb)
    o_ref[0] = jax.nn.sigmoid(h3 + b3_ref[...]).astype(o_ref.dtype)


def _probe_buffered():
    """One-time feature probe: does this JAX accept pipeline_mode=Buffered?"""
    if not hasattr(pl, "Buffered"):
        return False
    try:
        pl.BlockSpec((8, 128), lambda i: (0, 0), pipeline_mode=pl.Buffered(1))
        return True
    except (TypeError, ValueError):
        return False


_HAS_BUFFERED = _probe_buffered()


def _resident_spec(shape, single_buffer):
    """BlockSpec for an operand whose (whole-array) block never changes."""
    n = len(shape)

    def index_map(i):
        return (0,) * n

    if single_buffer and _HAS_BUFFERED:
        # Block index is constant across the grid -> a single VMEM copy is
        # enough; saves ~1 MiB of resident-weight double-buffering.
        return pl.BlockSpec(shape, index_map, pipeline_mode=pl.Buffered(1))
    return pl.BlockSpec(shape, index_map)


def _build_call(tb, n_steps, single_buffer):
    return pl.pallas_call(
        discriminator_kernel,
        out_shape=jax.ShapeDtypeStruct((n_steps, 1, tb), jnp.float32),
        grid_spec=pltpu.PrefetchScalarGridSpec(
            num_scalar_prefetch=0,
            grid=(n_steps,),
            in_specs=[
                pl.BlockSpec((tb, D_IN), lambda i: (i, 0)),        # x tile (bf16)
                _resident_spec((D_IN, D_H1), single_buffer),       # W1 (bf16)
                _resident_spec((1, D_H1), single_buffer),          # b1 (f32)
                _resident_spec((D_H1, D_H2), single_buffer),       # W2 (bf16)
                _resident_spec((1, D_H2), single_buffer),          # b2 (f32)
                _resident_spec((1, D_H2), single_buffer),          # w3 row (bf16)
                _resident_spec((1, D_OUT), single_buffer),         # b3 (f32)
            ],
            # Lane-dense output: one (1, tb) row per grid step.
            out_specs=pl.BlockSpec((1, 1, tb), lambda i: (i, 0, 0)),
        ),
        compiler_params=pltpu.CompilerParams(
            dimension_semantics=("parallel",),
            vmem_limit_bytes=48 * 1024 * 1024,
        ),
    )


def _round_up(v, m):
    return ((v + m - 1) // m) * m


def _choose_tiling(batch, block_b):
    """Pick (tb, n_steps, padded_batch).

    Minimizes tail padding by sizing the tile to the batch, and guarantees at
    least 2 (even) grid steps whenever the batch allows it so the 'parallel'
    axis can be sharded across v7x's two TensorCores.
    """
    b8 = _round_up(max(batch, 1), 8)
    n_steps = max(pl.cdiv(b8, block_b), 2 if b8 >= 16 else 1)
    if n_steps > 1 and n_steps % 2:
        n_steps += 1                       # balance across the two TensorCores
    tb = min(_round_up(pl.cdiv(b8, n_steps), 8), block_b)
    return tb, n_steps, tb * n_steps


def discriminator_forward(img, params, *, block_b=2048, cast_inputs_to_bf16=True):
    """img: (B, 1, 28, 28) NCHW -> validity (B, 1) float32.

    block_b=2048 amortizes per-step pipeline overhead while keeping VMEM
    (~20-30 MiB incl. double-buffered bf16 x and intermediates) under the
    48 MiB limit on every generation, including v7x's 64 MiB physical VMEM.
    On v5e/v6e (128 MiB physical) block_b=4096 with vmem_limit_bytes raised
    to ~80-96 MiB is also viable; do NOT carry that setting to v7x.

    NOTE: wrap this function in jax.jit in real use so the reshape / pad /
    bf16 cast of x fuses with the upstream producer instead of becoming a
    standalone f32->bf16 HBM round-trip.
    """
    assert block_b % 8 == 0, "batch tile must be a sublane multiple (8)"
    B = img.shape[0]
    x = img.reshape(B, -1)                                # == img.view(B, -1)
    assert x.shape[1] == D_IN
    # bf16 x halves the dominant HBM stream on the memory-bound v6e/v7x path;
    # f32 MXU accumulation keeps the math identical to an in-kernel cast.
    x = x.astype(jnp.bfloat16 if cast_inputs_to_bf16 else jnp.float32)

    w1, b1, w2, b2, w3, b3 = params
    w1 = w1.astype(jnp.bfloat16)                          # (784, 512)
    w2 = w2.astype(jnp.bfloat16)                          # (512, 256)
    w3_row = w3.reshape(1, D_H2).astype(jnp.bfloat16)     # (256, 1) -> (1, 256)
    b1 = b1.reshape(1, D_H1).astype(jnp.float32)
    b2 = b2.reshape(1, D_H2).astype(jnp.float32)
    b3 = b3.reshape(1, D_OUT).astype(jnp.float32)

    tb, n_steps, b_pad = _choose_tiling(B, block_b)
    if b_pad != B:
        x = jnp.pad(x, ((0, b_pad - B), (0, 0)))

    args = (x, w1, b1, w2, b2, w3_row, b3)

    def finish(out):
        # (n_steps, 1, tb) row-major == batch order; reshape is free.
        return out.reshape(-1)[:B].reshape(B, 1)

    if _HAS_BUFFERED:
        try:
            return finish(_build_call(tb, n_steps, single_buffer=True)(*args))
        except pltpu.LoweringException:
            # Narrow fallback: only the single-buffering knob is retried;
            # genuine kernel / compile errors propagate.
            pass
    return finish(_build_call(tb, n_steps, single_buffer=False)(*args))


def init_params(key):
    """Deterministic init mimicking PyTorch Linear's U(-1/sqrt(fan_in), +...)."""
    ks = jax.random.split(key, 6)

    def lin(kw, kb, fan_in, fan_out):
        bound = 1.0 / jnp.sqrt(fan_in)
        w = jax.random.uniform(kw, (fan_in, fan_out), jnp.float32, -bound, bound)
        b = jax.random.uniform(kb, (1, fan_out), jnp.float32, -bound, bound)
        return w, b

    w1, b1 = lin(ks[0], ks[1], D_IN, D_H1)
    w2, b2 = lin(ks[2], ks[3], D_H1, D_H2)
    w3, b3 = lin(ks[4], ks[5], D_H2, D_OUT)
    return (w1, b1, w2, b2, w3, b3)


def reference_forward(img, params):
    """Pure-JAX f32 reference (matches the PyTorch module) for checking."""
    w1, b1, w2, b2, w3, b3 = params
    x = img.reshape(img.shape[0], -1)
    h = x @ w1 + b1
    h = jnp.where(h > 0, h, 0.2 * h)
    h = h @ w2 + b2
    h = jnp.where(h > 0, h, 0.2 * h)
    h = h @ w3 + b3
    return jax.nn.sigmoid(h)


if __name__ == "__main__":
    key = jax.random.PRNGKey(0)
    k_img, k_params = jax.random.split(key)

    # Small demo batch; tiling chooses 2 grid steps of 8 rows each, which
    # exercises the pipeline and the (even) multi-step path.
    B = 16
    img = jax.random.normal(k_img, (B, 1, 28, 28), dtype=jnp.float32)
    params = init_params(k_params)

    out = discriminator_forward(img, params)
    out = jax.block_until_ready(out)
    ref = jax.block_until_ready(reference_forward(img, params))

    assert out.shape == (B, D_OUT), out.shape
    # bf16 MXU inputs (f32 accumulation) -> relaxed tolerance vs f32 reference.
    max_err = float(jnp.max(jnp.abs(out - ref)))
    assert max_err < 2e-2, f"mismatch: max abs err {max_err}"

    print("KERNEL_OK")
</pallas_src>

<mosaic_0001>
module attributes {stable_mosaic.version = 11 : i64} {
  func.func @discriminator_kernel(%arg0: i32, %arg1: memref<8x784xbf16, #tpu.memory_space<vmem>>, %arg2: memref<784x512xbf16, #tpu.memory_space<vmem>>, %arg3: memref<1x512xf32, #tpu.memory_space<vmem>>, %arg4: memref<512x256xbf16, #tpu.memory_space<vmem>>, %arg5: memref<1x256xf32, #tpu.memory_space<vmem>>, %arg6: memref<1x256xbf16, #tpu.memory_space<vmem>>, %arg7: memref<1x1xf32, #tpu.memory_space<vmem>>, %arg8: memref<1x1x8xf32, #tpu.memory_space<vmem>>) attributes {dimension_semantics = [#tpu.dimension_semantics<parallel>], iteration_bounds = array<i64: 2>, scalar_prefetch = 0 : i64, scratch_operands = 0 : i64, tpu.core_type = #tpu.core_type<tc>, window_params = [{transform_indices = @transform_0, window_bounds = array<i64: 8, 784>}, {pipeline_mode = #tpu.pipeline_mode<synchronous>, transform_indices = @transform_1, window_bounds = array<i64: 784, 512>}, {pipeline_mode = #tpu.pipeline_mode<synchronous>, transform_indices = @transform_2, window_bounds = array<i64: 1, 512>}, {pipeline_mode = #tpu.pipeline_mode<synchronous>, transform_indices = @transform_3, window_bounds = array<i64: 512, 256>}, {pipeline_mode = #tpu.pipeline_mode<synchronous>, transform_indices = @transform_4, window_bounds = array<i64: 1, 256>}, {pipeline_mode = #tpu.pipeline_mode<synchronous>, transform_indices = @transform_5, window_bounds = array<i64: 1, 256>}, {pipeline_mode = #tpu.pipeline_mode<synchronous>, transform_indices = @transform_6, window_bounds = array<i64: 1, 1>}, {transform_indices = @transform_7, window_bounds = array<i64: 1, 1, 8>}]} {
    %c0 = arith.constant 0 : index
    %c0_0 = arith.constant 0 : index
    %0 = vector.load %arg1[%c0, %c0_0] : memref<8x784xbf16, #tpu.memory_space<vmem>>, vector<8x784xbf16>
    %c0_1 = arith.constant 0 : index
    %c0_2 = arith.constant 0 : index
    %1 = vector.load %arg2[%c0_1, %c0_2] : memref<784x512xbf16, #tpu.memory_space<vmem>>, vector<784x512xbf16>
    %cst = arith.constant dense<0.000000e+00> : vector<8x512xf32>
    %2 = tpu.matmul %0, %1, %cst {dimension_numbers = #tpu.dot_dimension_numbers<[1], [0], [0], [1], [0, 0, 1, 1], [], []>} : vector<8x784xbf16>, vector<784x512xbf16>, vector<8x512xf32> -> vector<8x512xf32>
    %c0_3 = arith.constant 0 : index
    %c0_4 = arith.constant 0 : index
    %3 = vector.load %arg3[%c0_3, %c0_4] : memref<1x512xf32, #tpu.memory_space<vmem>>, vector<1x512xf32>
    %4 = vector.broadcast %3 : vector<1x512xf32> to vector<8x512xf32>
    %5 = arith.addf %2, %4 : vector<8x512xf32>
    %cst_5 = arith.constant 2.000000e-01 : f32
    %6 = vector.broadcast %cst_5 : f32 to vector<8x512xf32>
    %7 = arith.mulf %6, %5 : vector<8x512xf32>
    %8 = arith.maximumf %5, %7 : vector<8x512xf32>
    %9 = arith.truncf %8 : vector<8x512xf32> to vector<8x512xbf16>
    %c0_6 = arith.constant 0 : index
    %c0_7 = arith.constant 0 : index
    %10 = vector.load %arg4[%c0_6, %c0_7] : memref<512x256xbf16, #tpu.memory_space<vmem>>, vector<512x256xbf16>
    %cst_8 = arith.constant dense<0.000000e+00> : vector<8x256xf32>
    %11 = tpu.matmul %9, %10, %cst_8 {dimension_numbers = #tpu.dot_dimension_numbers<[1], [0], [0], [1], [0, 0, 1, 1], [], []>} : vector<8x512xbf16>, vector<512x256xbf16>, vector<8x256xf32> -> vector<8x256xf32>
    %c0_9 = arith.constant 0 : index
    %c0_10 = arith.constant 0 : index
    %12 = vector.load %arg5[%c0_9, %c0_10] : memref<1x256xf32, #tpu.memory_space<vmem>>, vector<1x256xf32>
    %13 = vector.broadcast %12 : vector<1x256xf32> to vector<8x256xf32>
    %14 = arith.addf %11, %13 : vector<8x256xf32>
    %cst_11 = arith.constant 2.000000e-01 : f32
    %15 = vector.broadcast %cst_11 : f32 to vector<8x256xf32>
    %16 = arith.mulf %15, %14 : vector<8x256xf32>
    %17 = arith.maximumf %14, %16 : vector<8x256xf32>
    %c0_12 = arith.constant 0 : index
    %c0_13 = arith.constant 0 : index
    %18 = vector.load %arg6[%c0_12, %c0_13] : memref<1x256xbf16, #tpu.memory_space<vmem>>, vector<1x256xbf16>
    %19 = arith.truncf %17 : vector<8x256xf32> to vector<8x256xbf16>
    %cst_14 = arith.constant dense<0.000000e+00> : vector<1x8xf32>
    %20 = tpu.matmul %18, %19, %cst_14 {dimension_numbers = #tpu.dot_dimension_numbers<[1], [1], [0], [0], [0, 0, 1, 0], [], []>} : vector<1x256xbf16>, vector<8x256xbf16>, vector<1x8xf32> -> vector<1x8xf32>
    %c0_15 = arith.constant 0 : index
    %c0_16 = arith.constant 0 : index
    %21 = vector.load %arg7[%c0_15, %c0_16] : memref<1x1xf32, #tpu.memory_space<vmem>>, vector<1x1xf32>
    %22 = vector.broadcast %21 : vector<1x1xf32> to vector<1x8xf32>
    %23 = arith.addf %20, %22 : vector<1x8xf32>
    %24 = arith.negf %23 : vector<1x8xf32>
    %25 = math.exp %24 : vector<1x8xf32>
    %cst_17 = arith.constant 1.000000e+00 : f32
    %26 = vector.broadcast %cst_17 : f32 to vector<1x8xf32>
    %27 = arith.addf %26, %25 : vector<1x8xf32>
    %28 = arith.divf %26, %27 : vector<1x8xf32>
    %c0_18 = arith.constant 0 : index
    %c0_19 = arith.constant 0 : index
    %c0_20 = arith.constant 0 : index
    %29 = vector.load %arg8[%c0_18, %c0_19, %c0_20] : memref<1x1x8xf32, #tpu.memory_space<vmem>>, vector<1x1x8xf32>
    %30 = vector.shape_cast %29 : vector<1x1x8xf32> to vector<1x8xf32>
    %31 = vector.shape_cast %28 : vector<1x8xf32> to vector<1x1x8xf32>
    tpu.vector_store %arg8[%c0_18, %c0_19, %c0_20], %31 {strides = array<i32>} : memref<1x1x8xf32, #tpu.memory_space<vmem>>, vector<1x1x8xf32>,
    return
  }
  func.func @transform_0(%arg0: i32) -> (i32, i32) {
    %c0_i32 = arith.constant 0 : i32
    %c0_i32_0 = arith.constant 0 : i32
    return %arg0, %c0_i32 : i32, i32
  }
  func.func @transform_1(%arg0: i32) -> (i32, i32) {
    %c0_i32 = arith.constant 0 : i32
    %c0_i32_0 = arith.constant 0 : i32
    %c0_i32_1 = arith.constant 0 : i32
    return %c0_i32, %c0_i32_0 : i32, i32
  }
  func.func @transform_2(%arg0: i32) -> (i32, i32) {
    %c0_i32 = arith.constant 0 : i32
    %c0_i32_0 = arith.constant 0 : i32
    %c0_i32_1 = arith.constant 0 : i32
    return %c0_i32, %c0_i32_0 : i32, i32
  }
  func.func @transform_3(%arg0: i32) -> (i32, i32) {
    %c0_i32 = arith.constant 0 : i32
    %c0_i32_0 = arith.constant 0 : i32
    %c0_i32_1 = arith.constant 0 : i32
    return %c0_i32, %c0_i32_0 : i32, i32
  }
  func.func @transform_4(%arg0: i32) -> (i32, i32) {
    %c0_i32 = arith.constant 0 : i32
    %c0_i32_0 = arith.constant 0 : i32
    %c0_i32_1 = arith.constant 0 : i32
    return %c0_i32, %c0_i32_0 : i32, i32
  }
  func.func @transform_5(%arg0: i32) -> (i32, i32) {
    %c0_i32 = arith.constant 0 : i32
    %c0_i32_0 = arith.constant 0 : i32
    %c0_i32_1 = arith.constant 0 : i32
    return %c0_i32, %c0_i32_0 : i32, i32
  }
  func.func @transform_6(%arg0: i32) -> (i32, i32) {
    %c0_i32 = arith.constant 0 : i32
    %c0_i32_0 = arith.constant 0 : i32
    %c0_i32_1 = arith.constant 0 : i32
    return %c0_i32, %c0_i32_0 : i32, i32
  }
  func.func @transform_7(%arg0: i32) -> (i32, i32, i32) {
    %c0_i32 = arith.constant 0 : i32
    %c0_i32_0 = arith.constant 0 : i32
    %c0_i32_1 = arith.constant 0 : i32
    return %arg0, %c0_i32, %c0_i32_0 : i32, i32, i32
  }
}

</mosaic_0001>

<bundles_post_ra>
// kernel: tpu_custom_call.1
= control target key start
LH: loop header
LB: loop body
LE: loop exit
PB: predicated region body
PF: predicated region fallthrough
CT: control target
= control target key end

     0   :  { %s3872_s0 = inlined_call_operand.hbm [shape: bf16[16,784], index: 0, kind: input, shape index: {}]   ;;  %s3873_s1 = inlined_call_operand.hbm [shape: bf16[784,512], index: 1, kind: input, shape index: {}]   ;;  %s3874_s2 = inlined_call_operand.vmem [shape: f32[1,512], index: 2, kind: input, shape index: {}]   ;;  %s3875_s3 = inlined_call_operand.hbm [shape: bf16[512,256], index: 3, kind: input, shape index: {}]   ;;  %s3876_s4 = inlined_call_operand.vmem [shape: f32[1,256], index: 4, kind: input, shape index: {}]   ;;  %s3877_s5 = inlined_call_operand.vmem [shape: bf16[1,256], index: 5, kind: input, shape index: {}]   ;;  %s3878_s6 = inlined_call_operand.<no memory space> [shape: f32[1,1], index: 6, kind: input, shape index: {}]   ;;  %s3879_s7 = inlined_call_operand.hbm [shape: f32[2,1,8], index: 7, kind: output, shape index: {}]  }
   0x1   :  { %v12_v0 = vstv %s3878_s6 }
   0x2   :  { %13 = vst [vmem:[#allocation2] sm:$0x1] %v12_v0 }
   0x3   :  { %14 = vsyncpa [#allocation4], 0 }
   0x4   :  { %16 = vsyncpa [#allocation4 + $0x1], 0 }
   0x5   :  { %17 = vsyncpa [#allocation7], 0 }
   0x6   :  { %18 = vsyncpa [#allocation5], 0 }
   0x7   :  { %20 = vsyncpa [#allocation5 + $0x1], 0  ;;  %s3566_s26 = smov 0   ;;  %s3568_s27 = smov 0  }
   0x8   :  { %s3570_s28 = smov 0   ;;  %s3572_s29 = smov 0  }
   0x9 LB: > { %s3587_s6 = sadd.s32 4294967295, %s3511_s29   ;;  %s2562_s30 = sadd.s32 4294967294, %s3511_s29   ;;  %s3511_s29 = sphi %s3572_s29, %s3899_s29   ;;  %s3507_s28 = sphi %s3570_s28, %s3898_s28   ;;  %s3503_s27 = sphi %s3568_s27, %s3897_s27   ;;  %s3499_s26 = sphi %s3566_s26, %s3896_s26  }
   0xa   : > { %p46_p0 = scmp.ne.s32.totalorder %s3503_s27, %s3499_s26  ;;  %p3880_p1 = scmp.eq.s32.totalorder %s3587_s6, 0 }
   0xb   : > { %p202_p3 = scmp.eq.s32.totalorder %s2562_s30, 1  ;;  %p2563_p5 = scmp.ge.s32.totalorder %s3511_s29, 1 }
   0xc   : > { %p3596_p4 = por %p3880_p1, %p46_p0  ;;  %p209_p7 = scmp.lt.s32.totalorder %s3511_s29, 3 }
   0xd   : > { %p3601_p6 = por %p202_p3, %p46_p0  ;;  %s3513_s11 = smov [#allocation6]  }
   0xe   : > { %s3883_s8 = scalar_select %p3596_p4, 1, 0 }
   0xf   : > { %s3884_s9 = scalar_select %p3601_p6, 1, 0 }
  0x10   : > { %p3606_p8 = pnand %p2563_p5, %p209_p7  ;;  %s221_s12 = sshll.u32 %s3513_s11, 4  ;;  %s3610_s12 = int_to_ptr.vmem [resolvable:$true] %s221_s12 }
  0x11   : > { %s3514_s14 = smov [#allocation8]   ;;  %s3355_s18 = scalar_lea.hbm %s3873_s1, 25088 }
  0x12   : > { %p2892_p9 = pneg %p3606_p8  ;;  %s237_s15 = sshll.u32 %s3514_s14, 4  ;;  %s3621_s15 = int_to_ptr.vmem [resolvable:$true] %s237_s15 }
  0x13   : > { %p3356_p12 = scmp.ne.s32.totalorder %s3873_s1, %s3355_s18  ;;  %p3362_p5 = scmp.lt.u32.totalorder %s3355_s18, %s3873_s1 }
  0x14   : > { %p3617_p11 = pnand %p2892_p9, %p3880_p1 }
  0x16   : > { %p3357_p13 = pneg %p3617_p11 }
  0x18   : > { %p3358_p0 = pnand %p3357_p13, %p3356_p12 }
  0x1a   : > { %p3359_p3 = pneg %p3358_p0 }
  0x1c   : > { %p3364_p7 = pnand %p3362_p5, %p3359_p3 }
  0x1e   : > { %3367 = shalt.err (!%p3364_p7)
}
  0x1f   : > { %s3368_s23 = scalar_lea.vmem %s3610_s12, 25088  ;;  %p3376_p2 = scmp.lt.s32.totalorder %s3610_s12, %s3610_s12 }
  0x20   : > { %p3369_p9 = scmp.ne.s32.totalorder %s3610_s12, %s3368_s23  ;;  %p3377_p12 = scmp.lt.s32.totalorder %s3368_s23, %s3368_s23 }
  0x22   : > { %p3371_p10 = pnand %p3369_p9, %p3357_p13  ;;  %p3378_p0 = por %p3377_p12, %p3376_p2 }
  0x24   : > { %p3372_p1 = pneg %p3371_p10 }
  0x26   : > { %p3379_p6 = pnand %p3378_p0, %p3372_p1 }
  0x28   : > { %3382 = shalt.err (!%p3379_p6)
}
  0x29   : > { %s3515_s24 = smov 256   ;;  %s3516_s25 = smov 16  }
  0x2a   : > { %2895 = dma.hbm_to_vmem [thread:$0]  (!%p3617_p11), %s3873_s1, 25088, %s3610_s12, [#allocation7], %s3515_s24, %s3515_s24, %s3516_s25  }
  0x2b   : > { %s3383_s17 = scalar_lea.hbm %s3875_s3, 8192 }
  0x2c   : > { %p3384_p2 = scmp.ne.s32.totalorder %s3875_s3, %s3383_s17  ;;  %p3390_p10 = scmp.lt.u32.totalorder %s3383_s17, %s3875_s3 }
  0x2e   : > { %p3386_p1 = pnand %p3384_p2, %p3357_p13 }
  0x30   : > { %p3387_p6 = pneg %p3386_p1 }
  0x32   : > { %p3392_p3 = pnand %p3390_p10, %p3387_p6 }
  0x34   : > { %3395 = shalt.err (!%p3392_p3)
}
  0x35   : > { %s3396_s12 = scalar_lea.vmem %s3621_s15, 8192  ;;  %p3404_p12 = scmp.lt.s32.totalorder %s3621_s15, %s3621_s15 }
  0x36   : > { %p3397_p5 = scmp.ne.s32.totalorder %s3621_s15, %s3396_s12  ;;  %p3405_p0 = scmp.lt.s32.totalorder %s3396_s12, %s3396_s12 }
  0x38   : > { %p3399_p7 = pnand %p3397_p5, %p3357_p13  ;;  %p3406_p2 = por %p3405_p0, %p3404_p12 }
  0x3a   : > { %p3400_p9 = pneg %p3399_p7 }
  0x3c   : > { %p3407_p1 = pnand %p3406_p2, %p3400_p9 }
  0x3e   : > { %3410 = shalt.err (!%p3407_p1)
}
  0x3f   : > { %s3517_s22 = smov 128   ;;  %s3518_s23 = smov 8  }
  0x40   : > { %2898 = dma.hbm_to_vmem [thread:$0]  (!%p3617_p11), %s3875_s3, 8192, %s3621_s15, [#allocation7], %s3517_s22, %s3517_s22, %s3518_s23  }
  0x41   : > { %s3676_s30 = sadd.s32 1, %s3511_s29   ;;  %s33_s14 = sadd.s32 1, %s3507_s28 }
  0x42   : > { %s30_s11 = ssub.s32 %s3511_s29, %s3676_s30  ;;  %p40_p6 = scmp.ne.s32.totalorder %s3507_s28, %s3503_s27 }
  0x43   : > { %p31_p13 = scmp.eq.s32.totalorder %s30_s11, 0  ;;  %p41_p10 = scmp.eq.s32.totalorder %s3511_s29, 0 }
  0x44   : > { %p3887_p5 = scmp.eq.s32.totalorder %s3587_s6, 1  ;;  %p2909_p9 = scmp.lt.s32.totalorder %s3511_s29, 2 }
  0x45   : > { %s3685_s16 = scalar_select %p31_p13, %s3507_s28, %s33_s14  }
  0x46   : > { %p42_p3 = por %p41_p10, %p40_p6  ;;  %p3689_p7 = por %p3887_p5, %p40_p6 }
  0x47   : > { %s260_s13 = sand.u32 1, %s3507_s28   ;;  %s2878_s15 = smul.u32 448, %s3511_s29 }
  0x48   : > { %s3888_s17 = scalar_select %p3689_p7, 1, 0 }
  0x49   : > { %s2877_s18 = smul.u32 28, %s260_s13  ;;  %p3696_p11 = pnand %p2909_p9, %p42_p3 }
  0x4a   : > { %s3703_s12 = scalar_lea.hbm %s3872_s0, %s2878_s15  ;;  %s261_s24 = scalar_lea.sflag [#allocation4], %s260_s13 }
  0x4b   : > { %s264_s22 = scalar_lea.vmem [#allocation3], %s2877_s18  ;;  %s3411_s25 = scalar_lea.hbm %s3703_s12, 448 }
  0x4c   : > { %s272_s23 = sshll.u32 %s264_s22, 4  ;;  %p3412_p12 = scmp.ne.s32.totalorder %s3703_s12, %s3411_s25  ;;  %s3705_s23 = int_to_ptr.vmem [resolvable:$true] %s272_s23 }
  0x4d   : > { %p3413_p0 = pneg %p3696_p11  ;;  %s3416_s15 = scalar_lea.hbm %s3872_s0, 896 }
  0x4e   : > { %p3417_p13 = scmp.lt.u32.totalorder %s3703_s12, %s3872_s0  ;;  %p3418_p6 = scmp.lt.u32.totalorder %s3416_s15, %s3411_s25 }
  0x4f   : > { %p3414_p2 = pnand %p3413_p0, %p3412_p12  ;;  %p3420_p3 = scmp.lt.u32.totalorder %s3411_s25, %s3703_s12 }
  0x50   : > { %p3419_p10 = por %p3418_p6, %p3417_p13 }
  0x51   : > { %p3415_p1 = pneg %p3414_p2 }
  0x52   : > { %p3421_p5 = por %p3420_p3, %p3419_p10 }
  0x54   : > { %p3422_p9 = pnand %p3421_p5, %p3415_p1 }
  0x56   : > { %3425 = shalt.err (!%p3422_p9)
}
  0x57   : > { %s3426_s13 = scalar_lea.vmem %s3705_s23, 448  ;;  %s3519_s18 = smov [#allocation3]  }
  0x58   : > { %p3427_p12 = scmp.ne.s32.totalorder %s3705_s23, %s3426_s13  ;;  %s3431_s22 = sshll.u32 %s3519_s18, 4  ;;  %s3432_s22 = int_to_ptr.vmem [resolvable:$false] %s3431_s22 }
  0x59   : > { %s3433_s11 = scalar_lea.vmem %s3432_s22, 896  ;;  %p3434_p4 = scmp.lt.s32.totalorder %s3705_s23, %s3432_s22 }
  0x5a   : > { %p3429_p2 = pnand %p3427_p12, %p3413_p0  ;;  %p3435_p13 = scmp.lt.s32.totalorder %s3433_s11, %s3426_s13 }
  0x5c   : > { %p3430_p7 = pneg %p3429_p2  ;;  %p3436_p6 = por %p3435_p13, %p3434_p4 }
  0x5e   : > { %p3437_p10 = pnand %p3436_p6, %p3430_p7 }
  0x60   : > { %3440 = shalt.err (!%p3437_p10)
}
  0x61   : > { %2902 = dma.hbm_to_vmem [thread:$0]  (!%p3696_p11), %s3703_s12, 448, %s3705_s23, %s261_s24  }
  0x62   : > { %281 = sbr.rel (%p3606_p8) target bundleno = 1083 (0x43b), region = 48  ;;  %s3735_s25 = sand.u32 (!%p3606_p8), 1, %s3503_s27  }
  0x63   : > { %s2879_s14 = smul.u32 (!%p3606_p8), 28, %s3735_s25  ;;  %s284_s15 = scalar_lea.sflag (!%p3606_p8), [#allocation4], %s3735_s25 }
  0x64   : > { %p3890_p4 = scmp.ne.s32.totalorder (!%p3606_p8), %s3883_s8, 0 }
  0x65   : > { %s3739_s20 = scalar_lea.vmem (!%p3606_p8), [#allocation3], %s2879_s14 }
  0x69   : > { %3486 = dma.done.wait (%p3890_p4), %s284_s15, 448  }
  0x6a   : > { %3488 = vsyncadd (%p3890_p4), %s284_s15, 4294966848  ;;  %p3891_p7 = scmp.eq.s32.totalorder %s3587_s6, 0 }
  0x6c   : > { %3490 = dma.done.wait (%p3891_p7), [#allocation7], 33280   ;;  %p3892_p8 = pmov %p3891_p7 }
  0x6d   : > { %v2954_v1 = vld [vmem:[#allocation6 + $0x4] ss:$16 sps:$4 sm:$0xff]   ;;  %v2958_v3 = vld [vmem:[#allocation6] ss:$16 sps:$4 sm:$0xff]   ;;  %v3520_v19 = vmov 0   ;;  %vm1552_vm0 = vcmask 130048  }
  0x6e   : > { %3492 = vsyncadd (%p3892_p8), [#allocation7], 4294934016  ;;  %v2956_v2 = vld [vmem:[#allocation6 + $0x204] ss:$16 sps:$4 sm:$0xff]   ;;  %1556 = vmatprep.subr.bf16.mxu1 %v2954_v1  ;;  %v2959_v4 = vld [vmem:[#allocation6 + $0x200] ss:$16 sps:$4 sm:$0xff]   ;;  %2953 = vset.pattern.permute.xlu0 %v3520_v19 }
  0x6f   : > { %1597 = vmatprep.subr.bf16.mxu0 %v2956_v2  ;;  %v2960_v5 = vld [vmem:[#allocation6 + $0x24] ss:$16 sps:$4 sm:$0xff]   ;;  %1557 = vmatpush1.bf16.msra.mxu1 %v2958_v3  ;;  %v2964_v7 = vld [vmem:[#allocation6 + $0x20] ss:$16 sps:$4 sm:$0xff]   ;;  %s2842_s21 = sshll.u32 %s3587_s6, 4  ;;  %s324_s13 = scalar_lea.vmem [#allocation9], %s3735_s25 }
  0x70   : > { %1598 = vmatpush1.bf16.msra.mxu0 %v2959_v4  ;;  %v2962_v6 = vld [vmem:[#allocation6 + $0x224] ss:$16 sps:$4 sm:$0xff]   ;;  %1558 = vmatprep.subr.bf16.mxu1 %v2960_v5  ;;  %v2965_v8 = vld [vmem:[#allocation6 + $0x220] ss:$16 sps:$4 sm:$0xff]   ;;  %s2477_s18 = sshll.u32 %s324_s13, 4  ;;  %vm2462_vm1 = vcmask 57344   ;;  %s3828_s14 = scalar_lea.hbm %s3879_s7, %s2842_s21  ;;  %s3830_s18 = int_to_ptr.vmem [resolvable:$true] %s2477_s18 }
  0x71   : > { %1599 = vmatprep.subr.bf16.mxu0 %v2962_v6  ;;  %v2966_v9 = vld [vmem:[#allocation6 + $0x44] ss:$16 sps:$4 sm:$0xff]   ;;  %v2970_v11 = vld [vmem:[#allocation6 + $0x40] ss:$16 sps:$4 sm:$0xff]   ;;  %s2465_s15 = scalar_lea.sflag [#allocation5], %s3735_s25  ;;  %p3893_p0 = scmp.ne.s32.totalorder %s3888_s17, 0 }
  0x72   : > { %v2968_v10 = vld [vmem:[#allocation6 + $0x244] ss:$16 sps:$4 sm:$0xff]   ;;  %v2971_v12 = vld [vmem:[#allocation6 + $0x240] ss:$16 sps:$4 sm:$0xff]   ;;  %s3522_s6 = smov [#allocation9]  }
  0x73   : > { %1559 = vmatpush1.bf16.msra.mxu1 %v2964_v7  ;;  %v2972_v13 = vld [vmem:[#allocation6 + $0x64] ss:$16 sps:$4 sm:$0xff]   ;;  %v2976_v15 = vld [vmem:[#allocation6 + $0x60] ss:$16 sps:$4 sm:$0xff]   ;;  %v3059_v7 = vld [vmem:[#allocation6 + $0xc] ss:$16 sps:$4 sm:$0xff]  }
  0x74   : > { %1600 = vmatpush1.bf16.msra.mxu0 %v2965_v8  ;;  %1560 = vmatprep.subr.bf16.mxu1 %v2966_v9  ;;  %v2974_v14 = vld [vmem:[#allocation6 + $0x264] ss:$16 sps:$4 sm:$0xff]   ;;  %v2977_v16 = vld [vmem:[#allocation6 + $0x260] ss:$16 sps:$4 sm:$0xff]   ;;  %s3445_s8 = sshll.u32 %s3522_s6, 4  ;;  %s3446_s8 = int_to_ptr.vmem [resolvable:$false] %s3445_s8 }
  0x75   : > { %1601 = vmatprep.subr.bf16.mxu0 %v2968_v10  ;;  %v2978_v17 = vld [vmem:[#allocation6 + $0x84] ss:$16 sps:$4 sm:$0xff]   ;;  %v2982_v20 = vld [vmem:[#allocation6 + $0x80] ss:$16 sps:$4 sm:$0xff]   ;;  %s3447_s10 = scalar_lea.vmem %s3446_s8, 32  ;;  %p3448_p5 = scmp.lt.s32.totalorder %s3830_s18, %s3446_s8 }
  0x76   : > { %v2980_v18 = vld [vmem:[#allocation6 + $0x284] ss:$16 sps:$4 sm:$0xff]   ;;  %v2983_v21 = vld [vmem:[#allocation6 + $0x280] ss:$16 sps:$4 sm:$0xff]  }
  0x77   : > { %1561 = vmatpush1.bf16.msra.mxu1 %v2970_v11  ;;  %v2984_v22 = vld [vmem:[#allocation6 + $0xa4] ss:$16 sps:$4 sm:$0xff]   ;;  %v2988_v24 = vld [vmem:[#allocation6 + $0xa0] ss:$16 sps:$4 sm:$0xff]   ;;  %v3057_v11 = vld [vmem:[#allocation6 + $0x8] ss:$16 sps:$4 sm:$0xff]  }
  0x78   : > { %1602 = vmatpush1.bf16.msra.mxu0 %v2971_v12  ;;  %1562 = vmatprep.subr.bf16.mxu1 %v2972_v13  ;;  %v2986_v23 = vld [vmem:[#allocation6 + $0x2a4] ss:$16 sps:$4 sm:$0xff]   ;;  %v2989_v25 = vld [vmem:[#allocation6 + $0x2a0] ss:$16 sps:$4 sm:$0xff]   ;;  %v3065_v13 = vld [vmem:[#allocation6 + $0x2c] ss:$16 sps:$4 sm:$0xff]  }
  0x79   : > { %1603 = vmatprep.subr.bf16.mxu0 %v2974_v14  ;;  %v2990_v26 = vld [vmem:[#allocation6 + $0xc4] ss:$16 sps:$4 sm:$0xff]   ;;  %v2994_v28 = vld [vmem:[#allocation6 + $0xc0] ss:$16 sps:$4 sm:$0xff]  }
  0x7a   : > { %v2992_v27 = vld [vmem:[#allocation6 + $0x2c4] ss:$16 sps:$4 sm:$0xff]   ;;  %v2995_v29 = vld [vmem:[#allocation6 + $0x2c0] ss:$16 sps:$4 sm:$0xff]  }
  0x7b   : > { %1563 = vmatpush1.bf16.msra.mxu1 %v2976_v15  ;;  %v2996_v30 = vld [vmem:[#allocation6 + $0xe4] ss:$16 sps:$4 sm:$0xff]   ;;  %v3000_v32 = vld [vmem:[#allocation6 + $0xe0] ss:$16 sps:$4 sm:$0xff]   ;;  %v3063_v15 = vld [vmem:[#allocation6 + $0x28] ss:$16 sps:$4 sm:$0xff]  }
  0x7c   : > { %1604 = vmatpush1.bf16.msra.mxu0 %v2977_v16  ;;  %1564 = vmatprep.subr.bf16.mxu1 %v2978_v17  ;;  %v2998_v31 = vld [vmem:[#allocation6 + $0x2e4] ss:$16 sps:$4 sm:$0xff]   ;;  %v3001_v33 = vld [vmem:[#allocation6 + $0x2e0] ss:$16 sps:$4 sm:$0xff]   ;;  %v3071_v17 = vld [vmem:[#allocation6 + $0x4c] ss:$16 sps:$4 sm:$0xff]  }
  0x7d   : > { %1605 = vmatprep.subr.bf16.mxu0 %v2980_v18  ;;  %v3002_v34 = vld [vmem:[#allocation6 + $0x104] ss:$16 sps:$4 sm:$0xff]   ;;  %v3006_v36 = vld [vmem:[#allocation6 + $0x100] ss:$16 sps:$4 sm:$0xff]  }
  0x7e   : > { %v3004_v35 = vld [vmem:[#allocation6 + $0x304] ss:$16 sps:$4 sm:$0xff]   ;;  %v3007_v37 = vld [vmem:[#allocation6 + $0x300] ss:$16 sps:$4 sm:$0xff]  }
  0x7f   : > { %1565 = vmatpush1.bf16.msra.mxu1 %v2982_v20  ;;  %v3008_v38 = vld [vmem:[#allocation6 + $0x124] ss:$16 sps:$4 sm:$0xff]   ;;  %v3012_v40 = vld [vmem:[#allocation6 + $0x120] ss:$16 sps:$4 sm:$0xff]   ;;  %v3069_v20 = vld [vmem:[#allocation6 + $0x48] ss:$16 sps:$4 sm:$0xff]  }
  0x80   : > { %1606 = vmatpush1.bf16.msra.mxu0 %v2983_v21  ;;  %1566 = vmatprep.subr.bf16.mxu1 %v2984_v22  ;;  %v3010_v39 = vld [vmem:[#allocation6 + $0x324] ss:$16 sps:$4 sm:$0xff]   ;;  %v3013_v41 = vld [vmem:[#allocation6 + $0x320] ss:$16 sps:$4 sm:$0xff]   ;;  %v3077_v22 = vld [vmem:[#allocation6 + $0x6c] ss:$16 sps:$4 sm:$0xff]  }
  0x81   : > { %1607 = vmatprep.subr.bf16.mxu0 %v2986_v23  ;;  %v3014_v42 = vld [vmem:[#allocation6 + $0x144] ss:$16 sps:$4 sm:$0xff]   ;;  %v3018_v44 = vld [vmem:[#allocation6 + $0x140] ss:$16 sps:$4 sm:$0xff]  }
  0x82   : > { %v3016_v43 = vld [vmem:[#allocation6 + $0x344] ss:$16 sps:$4 sm:$0xff]   ;;  %v3019_v45 = vld [vmem:[#allocation6 + $0x340] ss:$16 sps:$4 sm:$0xff]  }
  0x83   : > { %1567 = vmatpush1.bf16.msra.mxu1 %v2988_v24  ;;  %v3020_v46 = vld [vmem:[#allocation6 + $0x164] ss:$16 sps:$4 sm:$0xff]   ;;  %v3024_v51 = vld [vmem:[#allocation6 + $0x160] ss:$16 sps:$4 sm:$0xff]   ;;  %v3075_v24 = vld [vmem:[#allocation6 + $0x68] ss:$16 sps:$4 sm:$0xff]  }
  0x84   : > { %1608 = vmatpush1.bf16.msra.mxu0 %v2989_v25  ;;  %1568 = vmatprep.subr.bf16.mxu1 %v2990_v26  ;;  %v3022_v47 = vld [vmem:[#allocation6 + $0x364] ss:$16 sps:$4 sm:$0xff]   ;;  %v3025_v52 = vld [vmem:[#allocation6 + $0x360] ss:$16 sps:$4 sm:$0xff]   ;;  %v3083_v26 = vld [vmem:[#allocation6 + $0x8c] ss:$16 sps:$4 sm:$0xff]  }
  0x85   : > { %1609 = vmatprep.subr.bf16.mxu0 %v2992_v27  ;;  %v326_v48 = vld [vmem:[%s3739_s20] sm:$0xff]  ;;  %v327_v50 = vld [vmem:[%s3739_s20 + $0x8] sm:$0xff] }
  0x86   : > { %v3751_v49 = vcombine.high %v326_v48, %v326_v48  ;;  %v3754_v53 = vcombine.high %v327_v50, %v327_v50  ;;  %v3026_v54 = vld [vmem:[#allocation6 + $0x184] ss:$16 sps:$4 sm:$0xff]   ;;  %v3030_v56 = vld [vmem:[#allocation6 + $0x180] ss:$16 sps:$4 sm:$0xff]   ;;  %v3758_v8 = vcombine.low %v326_v48, %v326_v48  ;;  %v3760_v9 = vcombine.low %v327_v50, %v327_v50  ;;  %v3113_v48 = vld [vmem:[#allocation6 + $0x12c] ss:$16 sps:$4 sm:$0xff]  }
  0x87   : > { %1569 = vmatpush1.bf16.msra.mxu1 %v2994_v28  ;;  %v3028_v55 = vld [vmem:[#allocation6 + $0x384] ss:$16 sps:$4 sm:$0xff]   ;;  %v3031_v57 = vld [vmem:[#allocation6 + $0x380] ss:$16 sps:$4 sm:$0xff]   ;;  %v3081_v28 = vld [vmem:[#allocation6 + $0x88] ss:$16 sps:$4 sm:$0xff]  }
  0x88   : > { %1610 = vmatpush1.bf16.msra.mxu0 %v2995_v29  ;;  %1570 = vmatprep.subr.bf16.mxu1 %v2996_v30  ;;  %v3032_v58 = vld [vmem:[#allocation6 + $0x1a4] ss:$16 sps:$4 sm:$0xff]   ;;  %v3036_v60 = vld [vmem:[#allocation6 + $0x1a0] ss:$16 sps:$4 sm:$0xff]   ;;  %v3089_v30 = vld [vmem:[#allocation6 + $0xac] ss:$16 sps:$4 sm:$0xff]  }
  0x89   : > { %1611 = vmatprep.subr.bf16.mxu0 %v2998_v31  ;;  %1588 = vmatprep.mubr.bf16.mxu1 %v3751_v49  ;;  %v3034_v59 = vld [vmem:[#allocation6 + $0x3a4] ss:$16 sps:$4 sm:$0xff]   ;;  %v3037_v61 = vld [vmem:[#allocation6 + $0x3a0] ss:$16 sps:$4 sm:$0xff]   ;;  %v3111_v50 = vld [vmem:[#allocation6 + $0x128] ss:$16 sps:$4 sm:$0xff]  }
  0x8a   : > { %1629 = vmatprep.mubr.bf16.mxu0 %v3754_v53  ;;  %v3038_v62 = vld [vmem:[#allocation6 + $0x1c4] ss:$16 sps:$4 sm:$0xff]   ;;  %v3042_v0 = vld [vmem:[#allocation6 + $0x1c0] ss:$16 sps:$4 sm:$0xff]  }
  0x8b   : > { %1571 = vmatpush1.bf16.msra.mxu1 %v3000_v32  ;;  %v3040_v63 = vld [vmem:[#allocation6 + $0x3c4] ss:$16 sps:$4 sm:$0xff]   ;;  %v3043_v1 = vld [vmem:[#allocation6 + $0x3c0] ss:$16 sps:$4 sm:$0xff]   ;;  %v3087_v32 = vld [vmem:[#allocation6 + $0xa8] ss:$16 sps:$4 sm:$0xff]  }
  0x8c   : > { %1612 = vmatpush1.bf16.msra.mxu0 %v3001_v33  ;;  %1572 = vmatprep.subr.bf16.mxu1 %v3002_v34  ;;  %v3044_v2 = vld [vmem:[#allocation6 + $0x1e4] ss:$16 sps:$4 sm:$0xff]   ;;  %v3048_v4 = vld [vmem:[#allocation6 + $0x1e0] ss:$16 sps:$4 sm:$0xff]   ;;  %v3095_v34 = vld [vmem:[#allocation6 + $0xcc] ss:$16 sps:$4 sm:$0xff]  }
  0x8d   : > { %1613 = vmatprep.subr.bf16.mxu0 %v3004_v35  ;;  %v3046_v3 = vld [vmem:[#allocation6 + $0x3e4] ss:$16 sps:$4 sm:$0xff]   ;;  %v3049_v5 = vld [vmem:[#allocation6 + $0x3e0] ss:$16 sps:$4 sm:$0xff]  }
  0x8e   : > { %v3056_v6 = vld [vmem:[#allocation6 + $0x404] ss:$16 sps:$4 sm:$0xff]   ;;  %v3054_v10 = vld [vmem:[#allocation6 + $0x400] ss:$16 sps:$4 sm:$0xff]  }
  0x8f   : > { %1573 = vmatpush1.bf16.msra.mxu1 %v3006_v36  ;;  %v3062_v12 = vld [vmem:[#allocation6 + $0x424] ss:$16 sps:$4 sm:$0xff]   ;;  %v3060_v14 = vld [vmem:[#allocation6 + $0x420] ss:$16 sps:$4 sm:$0xff]  }
  0x90   : > { %1614 = vmatpush1.bf16.msra.mxu0 %v3007_v37  ;;  %1574 = vmatprep.subr.bf16.mxu1 %v3008_v38  ;;  %v3068_v16 = vld [vmem:[#allocation6 + $0x444] ss:$16 sps:$4 sm:$0xff]   ;;  %v3066_v18 = vld [vmem:[#allocation6 + $0x440] ss:$16 sps:$4 sm:$0xff]   ;;  %v3093_v38 = vld [vmem:[#allocation6 + $0xc8] ss:$16 sps:$4 sm:$0xff]  }
  0x91   : > { %1615 = vmatprep.subr.bf16.mxu0 %v3010_v39  ;;  %v3074_v21 = vld [vmem:[#allocation6 + $0x464] ss:$16 sps:$4 sm:$0xff]   ;;  %v3072_v23 = vld [vmem:[#allocation6 + $0x460] ss:$16 sps:$4 sm:$0xff]  }
  0x92   : > { %v3080_v25 = vld [vmem:[#allocation6 + $0x484] ss:$16 sps:$4 sm:$0xff]   ;;  %v3078_v27 = vld [vmem:[#allocation6 + $0x480] ss:$16 sps:$4 sm:$0xff]  }
  0x93   : > { %1575 = vmatpush1.bf16.msra.mxu1 %v3012_v40  ;;  %v3086_v29 = vld [vmem:[#allocation6 + $0x4a4] ss:$16 sps:$4 sm:$0xff]   ;;  %v3084_v31 = vld [vmem:[#allocation6 + $0x4a0] ss:$16 sps:$4 sm:$0xff]   ;;  %v3101_v40 = vld [vmem:[#allocation6 + $0xec] ss:$16 sps:$4 sm:$0xff]  }
  0x94   : > { %1616 = vmatpush1.bf16.msra.mxu0 %v3013_v41  ;;  %1576 = vmatprep.subr.bf16.mxu1 %v3014_v42  ;;  %v3092_v33 = vld [vmem:[#allocation6 + $0x4c4] ss:$16 sps:$4 sm:$0xff]   ;;  %v3090_v36 = vld [vmem:[#allocation6 + $0x4c0] ss:$16 sps:$4 sm:$0xff]   ;;  %v3099_v42 = vld [vmem:[#allocation6 + $0xe8] ss:$16 sps:$4 sm:$0xff]  }
  0x95   : > { %1617 = vmatprep.subr.bf16.mxu0 %v3016_v43  ;;  %v3766_v35 = vld [vmem:[%s3739_s20 + $0x10] sm:$0xff]  ;;  %v3096_v41 = vld [vmem:[#allocation6 + $0x4e0] ss:$16 sps:$4 sm:$0xff]  }
  0x96   : > { %v3770_v37 = vcombine.high %v3766_v35, %v3766_v35  ;;  %v3098_v39 = vld [vmem:[#allocation6 + $0x4e4] ss:$16 sps:$4 sm:$0xff]  }
  0x97   : > { %1577 = vmatpush1.bf16.msra.mxu1 %v3018_v44  ;;  %v3104_v43 = vld [vmem:[#allocation6 + $0x504] ss:$16 sps:$4 sm:$0xff]   ;;  %v3107_v44 = vld [vmem:[#allocation6 + $0x10c] ss:$16 sps:$4 sm:$0xff]  }
  0x98   : > { %1618 = vmatpush1.bf16.msra.mxu0 %v3019_v45  ;;  %1578 = vmatprep.subr.bf16.mxu1 %v3020_v46  ;;  %v3102_v45 = vld [vmem:[#allocation6 + $0x500] ss:$16 sps:$4 sm:$0xff]   ;;  %v3105_v46 = vld [vmem:[#allocation6 + $0x108] ss:$16 sps:$4 sm:$0xff]  }
  0x99   : > { %1619 = vmatprep.subr.bf16.mxu0 %v3022_v47  ;;  %v3110_v47 = vld [vmem:[#allocation6 + $0x524] ss:$16 sps:$4 sm:$0xff]  }
  0x9b   : > { %1579 = vmatpush1.bf16.msra.mxu1 %v3024_v51  ;;  %v3116_v51 = vld [vmem:[#allocation6 + $0x544] ss:$16 sps:$4 sm:$0xff]  }
  0x9c   : > { %1620 = vmatpush1.bf16.msra.mxu0 %v3025_v52  ;;  %1580 = vmatprep.subr.bf16.mxu1 %v3026_v54  ;;  %v3119_v52 = vld [vmem:[#allocation6 + $0x14c] ss:$16 sps:$4 sm:$0xff]   ;;  %v3114_v54 = vld [vmem:[#allocation6 + $0x540] ss:$16 sps:$4 sm:$0xff]  }
  0x9d   : > { %1621 = vmatprep.subr.bf16.mxu0 %v3028_v55  ;;  %v3117_v55 = vld [vmem:[#allocation6 + $0x148] ss:$16 sps:$4 sm:$0xff]  }
  0x9f   : > { %1581 = vmatpush1.bf16.msra.mxu1 %v3030_v56  ;;  %v3122_v56 = vld [vmem:[#allocation6 + $0x564] ss:$16 sps:$4 sm:$0xff]  }
  0xa0   : > { %1622 = vmatpush1.bf16.msra.mxu0 %v3031_v57  ;;  %1582 = vmatprep.subr.bf16.mxu1 %v3032_v58  ;;  %v3125_v57 = vld [vmem:[#allocation6 + $0x16c] ss:$16 sps:$4 sm:$0xff]   ;;  %v3120_v58 = vld [vmem:[#allocation6 + $0x560] ss:$16 sps:$4 sm:$0xff]  }
  0xa1   : > { %1623 = vmatprep.subr.bf16.mxu0 %v3034_v59  ;;  %v3123_v59 = vld [vmem:[#allocation6 + $0x168] ss:$16 sps:$4 sm:$0xff]  }
  0xa3   : > { %1583 = vmatpush1.bf16.msra.mxu1 %v3036_v60  ;;  %v3128_v60 = vld [vmem:[#allocation6 + $0x584] ss:$16 sps:$4 sm:$0xff]  }
  0xa4   : > { %1624 = vmatpush1.bf16.msra.mxu0 %v3037_v61  ;;  %1584 = vmatprep.subr.bf16.mxu1 %v3038_v62  ;;  %v3131_v61 = vld [vmem:[#allocation6 + $0x18c] ss:$16 sps:$4 sm:$0xff]   ;;  %v3126_v62 = vld [vmem:[#allocation6 + $0x580] ss:$16 sps:$4 sm:$0xff]  }
  0xa5   : > { %1625 = vmatprep.subr.bf16.mxu0 %v3040_v63  ;;  %v3129_v63 = vld [vmem:[#allocation6 + $0x188] ss:$16 sps:$4 sm:$0xff]  }
  0xa7   : > { %1585 = vmatpush1.bf16.msra.mxu1 %v3042_v0  ;;  %v3134_v0 = vld [vmem:[#allocation6 + $0x5a4] ss:$16 sps:$4 sm:$0xff]  }
  0xa8   : > { %1626 = vmatpush1.bf16.msra.mxu0 %v3043_v1  ;;  %1586 = vmatprep.subr.bf16.mxu1 %v3044_v2  ;;  %v3137_v1 = vld [vmem:[#allocation6 + $0x1ac] ss:$16 sps:$4 sm:$0xff]   ;;  %v3132_v2 = vld [vmem:[#allocation6 + $0x5a0] ss:$16 sps:$4 sm:$0xff]  }
  0xa9   : > { %1627 = vmatprep.subr.bf16.mxu0 %v3046_v3  ;;  %v3135_v3 = vld [vmem:[#allocation6 + $0x1a8] ss:$16 sps:$4 sm:$0xff]  }
  0xab   : > { %1587 = vmatpush1.bf16.msra.mxu1 %v3048_v4  ;;  %v3140_v4 = vld [vmem:[#allocation6 + $0x5c4] ss:$16 sps:$4 sm:$0xff]  }
  0xac   : > { %1628 = vmatpush1.bf16.msra.mxu0 %v3049_v5  ;;  %1720 = vmatprep.subr.bf16.mxu1 %v3059_v7  ;;  %v3143_v5 = vld [vmem:[#allocation6 + $0x1cc] ss:$16 sps:$4 sm:$0xff]   ;;  %v3141_v7 = vld [vmem:[#allocation6 + $0x1c8] ss:$16 sps:$4 sm:$0xff]  }
  0xad   : > { %1638 = vmatprep.subr.bf16.mxu0 %v3056_v6  ;;  %v3138_v6 = vld [vmem:[#allocation6 + $0x5c0] ss:$16 sps:$4 sm:$0xff]  }
  0xae   : > { %1589 = vmatmul.mubr.bf16.vlgmr.msra.gmra.mrb[0].mxu1 %v3758_v8 }
  0xaf   : > { %1630 = vmatmul.mubr.bf16.vlgmr.msra.gmra.mrb[0].mxu0 %v3760_v9  ;;  %1721 = vmatpush1.bf16.msra.mxu1 %v3057_v11  ;;  %v3149_v11 = vld [vmem:[#allocation6 + $0x1ec] ss:$16 sps:$4 sm:$0xff]  }
  0xb0   : > { %1639 = vmatpush1.bf16.msra.mxu0 %v3054_v10  ;;  %1722 = vmatprep.subr.bf16.mxu1 %v3065_v13  ;;  %v3146_v10 = vld [vmem:[#allocation6 + $0x5e4] ss:$16 sps:$4 sm:$0xff]   ;;  %v3147_v13 = vld [vmem:[#allocation6 + $0x1e8] ss:$16 sps:$4 sm:$0xff]  }
  0xb1   : > { %1640 = vmatprep.subr.bf16.mxu0 %v3062_v12  ;;  %1752 = vmatprep.mubr.bf16.mxu1 %v3751_v49  ;;  %v3108_v49 = vld [vmem:[#allocation6 + $0x520] ss:$16 sps:$4 sm:$0xff]  }
  0xb2   : > { %1670 = vmatprep.mubr.bf16.mxu0 %v3770_v37  ;;  %v3144_v12 = vld [vmem:[#allocation6 + $0x5e0] ss:$16 sps:$4 sm:$0xff]  }
  0xb3   : > { %1723 = vmatpush1.bf16.msra.mxu1 %v3063_v15  ;;  %v3160_v15 = vld [vmem:[#allocation6 + $0x604] ss:$16 sps:$4 sm:$0xff]  }
  0xb4   : > { %1641 = vmatpush1.bf16.msra.mxu0 %v3060_v14  ;;  %1724 = vmatprep.subr.bf16.mxu1 %v3071_v17  ;;  %v3154_v14 = vld [vmem:[#allocation6 + $0x20c] ss:$16 sps:$4 sm:$0xff]   ;;  %v3152_v17 = vld [vmem:[#allocation6 + $0x208] ss:$16 sps:$4 sm:$0xff]  }
  0xb5   : > { %1642 = vmatprep.subr.bf16.mxu0 %v3068_v16  ;;  %v3775_v16 = vcombine.low %v3766_v35, %v3766_v35  ;;  %v3177_v35 = vld [vmem:[#allocation6 + $0x2e8] ss:$16 sps:$4 sm:$0xff]  }
  0xb7   : > { %1725 = vmatpush1.bf16.msra.mxu1 %v3069_v20  ;;  %v3157_v20 = vld [vmem:[#allocation6 + $0x22c] ss:$16 sps:$4 sm:$0xff]  }
  0xb8   : > { %1643 = vmatpush1.bf16.msra.mxu0 %v3066_v18  ;;  %1726 = vmatprep.subr.bf16.mxu1 %v3077_v22  ;;  %v3158_v18 = vld [vmem:[#allocation6 + $0x600] ss:$16 sps:$4 sm:$0xff]   ;;  %v3163_v22 = vld [vmem:[#allocation6 + $0x24c] ss:$16 sps:$4 sm:$0xff]  }
  0xb9   : > { %1644 = vmatprep.subr.bf16.mxu0 %v3074_v21  ;;  %v3155_v21 = vld [vmem:[#allocation6 + $0x228] ss:$16 sps:$4 sm:$0xff]  }
  0xbb   : > { %1727 = vmatpush1.bf16.msra.mxu1 %v3075_v24  ;;  %v3167_v24 = vld [vmem:[#allocation6 + $0x26c] ss:$16 sps:$4 sm:$0xff]  }
  0xbc   : > { %1645 = vmatpush1.bf16.msra.mxu0 %v3072_v23  ;;  %1728 = vmatprep.subr.bf16.mxu1 %v3083_v26  ;;  %v3161_v23 = vld [vmem:[#allocation6 + $0x248] ss:$16 sps:$4 sm:$0xff]  }
  0xbd   : > { %1646 = vmatprep.subr.bf16.mxu0 %v3080_v25  ;;  %v3782_v25 = vld [vmem:[%s3739_s20 + $0x18] ss:$0 sps:$4 sm:$0xff]   ;;  %v3165_v26 = vld [vmem:[#allocation6 + $0x268] ss:$16 sps:$4 sm:$0xff]   ;;  %s3441_s20 = scalar_lea.vmem %s3830_s18, 16 }
  0xbe   : > { %p3442_p11 = scmp.ne.s32.totalorder %s3830_s18, %s3441_s20  ;;  %p3449_p9 = scmp.lt.s32.totalorder %s3447_s10, %s3441_s20 }
  0xbf   : > { %1729 = vmatpush1.bf16.msra.mxu1 %v3081_v28  ;;  %v3173_v28 = vld [vmem:[#allocation6 + $0x2ac] ss:$16 sps:$4 sm:$0xff]  }
  0xc0   : > { %1647 = vmatpush1.bf16.msra.mxu0 %v3078_v27  ;;  %1730 = vmatprep.subr.bf16.mxu1 %v3089_v30  ;;  %v3170_v27 = vld [vmem:[#allocation6 + $0x28c] ss:$16 sps:$4 sm:$0xff]   ;;  %p3443_p1 = pnand %p3442_p11, %p3893_p0  ;;  %p3450_p12 = por %p3449_p9, %p3448_p5 }
  0xc1   : > { %1648 = vmatprep.subr.bf16.mxu0 %v3086_v29  ;;  %v3171_v29 = vld [vmem:[#allocation6 + $0x2a8] ss:$16 sps:$4 sm:$0xff]   ;;  %v3176_v30 = vld [vmem:[#allocation6 + $0x2cc] ss:$16 sps:$4 sm:$0xff]  }
  0xc2   : > { %p3444_p3 = pneg %p3443_p1 }
  0xc3   : > { %1731 = vmatpush1.bf16.msra.mxu1 %v3087_v32  ;;  %v3255_v32 = vld [vmem:[#allocation8] ss:$8 sps:$4 sm:$0xff]  }
  0xc4   : > { %1649 = vmatpush1.bf16.msra.mxu0 %v3084_v31  ;;  %1732 = vmatprep.subr.bf16.mxu1 %v3095_v34  ;;  %v3179_v31 = vld [vmem:[#allocation6 + $0x2ec] ss:$16 sps:$4 sm:$0xff]   ;;  %p3451_p2 = pnand %p3450_p12, %p3444_p3 }
  0xc5   : > { %1650 = vmatprep.subr.bf16.mxu0 %v3092_v33  ;;  %v3257_v33 = vld [vmem:[#allocation8 + $0x4] ss:$8 sps:$4 sm:$0xff]   ;;  %v3260_v34 = vld [vmem:[#allocation8 + $0x14] ss:$8 sps:$4 sm:$0xff]  }
  0xc7   : > { %1733 = vmatpush1.bf16.msra.mxu1 %v3093_v38  ;;  %v3182_v38 = vld [vmem:[#allocation6 + $0x30c] ss:$16 sps:$4 sm:$0xff]  }
  0xc8   : > { %1651 = vmatpush1.bf16.msra.mxu0 %v3090_v36  ;;  %1734 = vmatprep.subr.bf16.mxu1 %v3101_v40  ;;  %v3258_v36 = vld [vmem:[#allocation8 + $0x10] ss:$8 sps:$4 sm:$0xff]  }
  0xc9   : > { %1652 = vmatprep.subr.bf16.mxu0 %v3098_v39  ;;  %v3263_v39 = vld [vmem:[#allocation8 + $0x24] ss:$8 sps:$4 sm:$0xff]   ;;  %v3180_v40 = vld [vmem:[#allocation6 + $0x308] ss:$16 sps:$4 sm:$0xff]  }
  0xcb   : > { %1735 = vmatpush1.bf16.msra.mxu1 %v3099_v42  ;;  %v3185_v42 = vld [vmem:[#allocation6 + $0x32c] ss:$16 sps:$4 sm:$0xff]  }
  0xcc   : > { %1653 = vmatpush1.bf16.msra.mxu0 %v3096_v41  ;;  %1736 = vmatprep.subr.bf16.mxu1 %v3107_v44  ;;  %v3261_v41 = vld [vmem:[#allocation8 + $0x20] ss:$8 sps:$4 sm:$0xff]  }
  0xcd   : > { %1654 = vmatprep.subr.bf16.mxu0 %v3104_v43  ;;  %v3266_v43 = vld [vmem:[#allocation8 + $0x34] ss:$8 sps:$4 sm:$0xff]   ;;  %v3183_v44 = vld [vmem:[#allocation6 + $0x328] ss:$16 sps:$4 sm:$0xff]  }
  0xcf   : > { %1737 = vmatpush1.bf16.msra.mxu1 %v3105_v46  ;;  %v3188_v46 = vld [vmem:[#allocation6 + $0x34c] ss:$16 sps:$4 sm:$0xff]  }
  0xd0   : > { %1655 = vmatpush1.bf16.msra.mxu0 %v3102_v45  ;;  %1738 = vmatprep.subr.bf16.mxu1 %v3113_v48  ;;  %v3264_v45 = vld [vmem:[#allocation8 + $0x30] ss:$8 sps:$4 sm:$0xff]  }
  0xd1   : > { %1656 = vmatprep.subr.bf16.mxu0 %v3110_v47  ;;  %v3269_v47 = vld [vmem:[#allocation8 + $0x44] ss:$8 sps:$4 sm:$0xff]   ;;  %v3186_v48 = vld [vmem:[#allocation6 + $0x348] ss:$16 sps:$4 sm:$0xff]  }
  0xd3   : > { %1739 = vmatpush1.bf16.msra.mxu1 %v3111_v50  ;;  %v3191_v50 = vld [vmem:[#allocation6 + $0x36c] ss:$16 sps:$4 sm:$0xff]  }
  0xd4   : > { %1657 = vmatpush1.bf16.msra.mxu0 %v3108_v49  ;;  %1740 = vmatprep.subr.bf16.mxu1 %v3119_v52  ;;  %v3267_v49 = vld [vmem:[#allocation8 + $0x40] ss:$8 sps:$4 sm:$0xff]  }
  0xd5   : > { %1658 = vmatprep.subr.bf16.mxu0 %v3116_v51  ;;  %v3272_v51 = vld [vmem:[#allocation8 + $0x54] ss:$8 sps:$4 sm:$0xff]   ;;  %v3189_v52 = vld [vmem:[#allocation6 + $0x368] ss:$16 sps:$4 sm:$0xff]  }
  0xd7   : > { %1741 = vmatpush1.bf16.msra.mxu1 %v3117_v55  ;;  %v3194_v55 = vld [vmem:[#allocation6 + $0x38c] ss:$16 sps:$4 sm:$0xff]  }
  0xd8   : > { %1659 = vmatpush1.bf16.msra.mxu0 %v3114_v54  ;;  %1742 = vmatprep.subr.bf16.mxu1 %v3125_v57  ;;  %v3270_v54 = vld [vmem:[#allocation8 + $0x50] ss:$8 sps:$4 sm:$0xff]  }
  0xd9   : > { %1660 = vmatprep.subr.bf16.mxu0 %v3122_v56  ;;  %v3275_v56 = vld [vmem:[#allocation8 + $0x64] ss:$8 sps:$4 sm:$0xff]   ;;  %v3192_v57 = vld [vmem:[#allocation6 + $0x388] ss:$16 sps:$4 sm:$0xff]  }
  0xdb   : > { %1743 = vmatpush1.bf16.msra.mxu1 %v3123_v59  ;;  %v3197_v59 = vld [vmem:[#allocation6 + $0x3ac] ss:$16 sps:$4 sm:$0xff]  }
  0xdc   : > { %1661 = vmatpush1.bf16.msra.mxu0 %v3120_v58  ;;  %1744 = vmatprep.subr.bf16.mxu1 %v3131_v61  ;;  %v3273_v58 = vld [vmem:[#allocation8 + $0x60] ss:$8 sps:$4 sm:$0xff]  }
  0xdd   : > { %1662 = vmatprep.subr.bf16.mxu0 %v3128_v60  ;;  %v3278_v60 = vld [vmem:[#allocation8 + $0x74] ss:$8 sps:$4 sm:$0xff]   ;;  %v3195_v61 = vld [vmem:[#allocation6 + $0x3a8] ss:$16 sps:$4 sm:$0xff]  }
  0xdf   : > { %1745 = vmatpush1.bf16.msra.mxu1 %v3129_v63  ;;  %v3200_v63 = vld [vmem:[#allocation6 + $0x3cc] ss:$16 sps:$4 sm:$0xff]  }
  0xe0   : > { %1663 = vmatpush1.bf16.msra.mxu0 %v3126_v62  ;;  %1746 = vmatprep.subr.bf16.mxu1 %v3137_v1  ;;  %v3276_v62 = vld [vmem:[#allocation8 + $0x70] ss:$8 sps:$4 sm:$0xff]  }
  0xe1   : > { %1664 = vmatprep.subr.bf16.mxu0 %v3134_v0  ;;  %v3281_v0 = vld [vmem:[#allocation8 + $0x84] ss:$8 sps:$4 sm:$0xff]   ;;  %v3198_v1 = vld [vmem:[#allocation6 + $0x3c8] ss:$16 sps:$4 sm:$0xff]  }
  0xe3   : > { %1747 = vmatpush1.bf16.msra.mxu1 %v3135_v3  ;;  %v3203_v3 = vld [vmem:[#allocation6 + $0x3ec] ss:$16 sps:$4 sm:$0xff]  }
  0xe4   : > { %1665 = vmatpush1.bf16.msra.mxu0 %v3132_v2  ;;  %1748 = vmatprep.subr.bf16.mxu1 %v3143_v5  ;;  %v3279_v2 = vld [vmem:[#allocation8 + $0x80] ss:$8 sps:$4 sm:$0xff]  }
  0xe5   : > { %1666 = vmatprep.subr.bf16.mxu0 %v3140_v4  ;;  %v3284_v4 = vld [vmem:[#allocation8 + $0x94] ss:$8 sps:$4 sm:$0xff]   ;;  %v3201_v5 = vld [vmem:[#allocation6 + $0x3e8] ss:$16 sps:$4 sm:$0xff]  }
  0xe7   : > { %1749 = vmatpush1.bf16.msra.mxu1 %v3141_v7  ;;  %v3206_v7 = vld [vmem:[#allocation6 + $0x40c] ss:$16 sps:$4 sm:$0xff]  }
  0xe8   : > { %1667 = vmatpush1.bf16.msra.mxu0 %v3138_v6  ;;  %1750 = vmatprep.subr.bf16.mxu1 %v3149_v11  ;;  %v3282_v6 = vld [vmem:[#allocation8 + $0x90] ss:$8 sps:$4 sm:$0xff]  }
  0xe9   : > { %1668 = vmatprep.subr.bf16.mxu0 %v3146_v10  ;;  %v3287_v10 = vld [vmem:[#allocation8 + $0xa4] ss:$8 sps:$4 sm:$0xff]   ;;  %v3204_v11 = vld [vmem:[#allocation6 + $0x408] ss:$16 sps:$4 sm:$0xff]  }
  0xeb   : > { %1751 = vmatpush1.bf16.msra.mxu1 %v3147_v13  ;;  %v3285_v13 = vld [vmem:[#allocation8 + $0xa0] ss:$8 sps:$4 sm:$0xff]  }
  0xec   : > { %1669 = vmatpush1.bf16.msra.mxu0 %v3144_v12  ;;  %1761 = vmatprep.subr.bf16.mxu1 %v3154_v14  ;;  %v3209_v12 = vld [vmem:[#allocation6 + $0x42c] ss:$16 sps:$4 sm:$0xff]  }
  0xed   : > { %1679 = vmatprep.subr.bf16.mxu0 %v3160_v15  ;;  %v3290_v14 = vld [vmem:[#allocation8 + $0xb4] ss:$8 sps:$4 sm:$0xff]   ;;  %v3207_v15 = vld [vmem:[#allocation6 + $0x428] ss:$16 sps:$4 sm:$0xff]  }
  0xee   : > { %1753 = vmatmul.mubr.bf16.vlgmr.msra.gmra.mrb[4].mxu1 %v3758_v8  ;;  %v3168_v8 = vld [vmem:[#allocation6 + $0x288] ss:$16 sps:$4 sm:$0xff]  }
  0xef   : > { %1671 = vmatmul.mubr.bf16.vlgmr.msra.gmra.mrb[0].mxu0 %v3775_v16  ;;  %1762 = vmatpush1.bf16.msra.mxu1 %v3152_v17  ;;  %v3212_v17 = vld [vmem:[#allocation6 + $0x44c] ss:$16 sps:$4 sm:$0xff]  }
  0xf0   : > { %1680 = vmatpush1.bf16.msra.mxu0 %v3158_v18  ;;  %1763 = vmatprep.subr.bf16.mxu1 %v3157_v20  ;;  %v3288_v18 = vld [vmem:[#allocation8 + $0xb0] ss:$8 sps:$4 sm:$0xff]   ;;  %v3293_v20 = vld [vmem:[#allocation8 + $0xc4] ss:$8 sps:$4 sm:$0xff]  }
  0xf1   : > { %1711 = vmatprep.mubr.bf16.mxu0 %v3520_v19  ;;  %1793 = vmatprep.mubr.bf16.mxu1 %v3754_v53  ;;  %v3174_v53 = vld [vmem:[#allocation6 + $0x2c8] ss:$16 sps:$4 sm:$0xff]  }
  0xf2   : > { %2292 = vmatprep.subr.bf16.mxu0 %v3257_v33  ;;  %v3228_v33 = vld [vmem:[#allocation6 + $0x508] ss:$16 sps:$4 sm:$0xff]  }
  0xf3   : > { %1764 = vmatpush1.bf16.msra.mxu1 %v3155_v21  ;;  %v3210_v21 = vld [vmem:[#allocation6 + $0x448] ss:$16 sps:$4 sm:$0xff]  }
  0xf4   : > { %1765 = vmatprep.subr.bf16.mxu1 %v3163_v22  ;;  %v3215_v22 = vld [vmem:[#allocation6 + $0x46c] ss:$16 sps:$4 sm:$0xff]  }
  0xf7   : > { %1766 = vmatpush1.bf16.msra.mxu1 %v3161_v23  ;;  %v3291_v23 = vld [vmem:[#allocation8 + $0xc0] ss:$8 sps:$4 sm:$0xff]  }
  0xf8   : > { %1767 = vmatprep.subr.bf16.mxu1 %v3167_v24  ;;  %v3296_v24 = vld [vmem:[#allocation8 + $0xd4] ss:$8 sps:$4 sm:$0xff]  }
  0xfb   : > { %2774 = vmatmul.mubr.msk.bf16.vlgmr.msra.gmra.mrb[0].mxu0 %vm1552_vm0, %v3782_v25  ;;  %1768 = vmatpush1.bf16.msra.mxu1 %v3165_v26  ;;  %v3218_v26 = vld [vmem:[#allocation6 + $0x48c] ss:$16 sps:$4 sm:$0xff]  }
  0xfc   : > { %1769 = vmatprep.subr.bf16.mxu1 %v3170_v27  ;;  %2293 = vmatpush1.bf16.msra.mxu0 %v3255_v32  ;;  %v3216_v27 = vld [vmem:[#allocation6 + $0x488] ss:$16 sps:$4 sm:$0xff]   ;;  %v3230_v32 = vld [vmem:[#allocation6 + $0x50c] ss:$16 sps:$4 sm:$0xff]  }
  0xfd   : > { %2294 = vmatprep.subr.bf16.mxu0 %v3260_v34  ;;  %v3233_v34 = vld [vmem:[#allocation6 + $0x52c] ss:$16 sps:$4 sm:$0xff]  }
  0xff   : > { %1770 = vmatpush1.bf16.msra.mxu1 %v3168_v8  ;;  %v3221_v8 = vld [vmem:[#allocation6 + $0x4ac] ss:$16 sps:$4 sm:$0xff]  }
 0x100   : > { %1771 = vmatprep.subr.bf16.mxu1 %v3173_v28  ;;  %2295 = vmatpush1.bf16.msra.mxu0 %v3258_v36  ;;  %v3219_v28 = vld [vmem:[#allocation6 + $0x4a8] ss:$16 sps:$4 sm:$0xff]  }
 0x101   : > { %2296 = vmatprep.subr.bf16.mxu0 %v3263_v39  ;;  %v3231_v36 = vld [vmem:[#allocation6 + $0x528] ss:$16 sps:$4 sm:$0xff]   ;;  %v3236_v39 = vld [vmem:[#allocation6 + $0x54c] ss:$16 sps:$4 sm:$0xff]  }
 0x103   : > { %1772 = vmatpush1.bf16.msra.mxu1 %v3171_v29  ;;  %v3224_v29 = vld [vmem:[#allocation6 + $0x4cc] ss:$16 sps:$4 sm:$0xff]  }
 0x104   : > { %1773 = vmatprep.subr.bf16.mxu1 %v3176_v30  ;;  %2297 = vmatpush1.bf16.msra.mxu0 %v3261_v41  ;;  %v3222_v30 = vld [vmem:[#allocation6 + $0x4c8] ss:$16 sps:$4 sm:$0xff]  }
 0x105   : > { %2298 = vmatprep.subr.bf16.mxu0 %v3266_v43  ;;  %v3234_v41 = vld [vmem:[#allocation6 + $0x548] ss:$16 sps:$4 sm:$0xff]   ;;  %v3239_v43 = vld [vmem:[#allocation6 + $0x56c] ss:$16 sps:$4 sm:$0xff]  }
 0x107   : > { %1774 = vmatpush1.bf16.msra.mxu1 %v3174_v53  ;;  %v3227_v53 = vld [vmem:[#allocation6 + $0x4ec] ss:$16 sps:$4 sm:$0xff]  }
 0x108   : > { %1775 = vmatprep.subr.bf16.mxu1 %v3179_v31  ;;  %2299 = vmatpush1.bf16.msra.mxu0 %v3264_v45  ;;  %v3225_v31 = vld [vmem:[#allocation6 + $0x4e8] ss:$16 sps:$4 sm:$0xff]   ;;  %v3242_v45 = vld [vmem:[#allocation6 + $0x58c] ss:$16 sps:$4 sm:$0xff]  }
 0x109   : > { %2300 = vmatprep.subr.bf16.mxu0 %v3269_v47  ;;  %v3240_v47 = vld [vmem:[#allocation6 + $0x588] ss:$16 sps:$4 sm:$0xff]  }
 0x10b   : > { %1776 = vmatpush1.bf16.msra.mxu1 %v3177_v35  ;;  %v3299_v35 = vld [vmem:[#allocation8 + $0xe4] ss:$8 sps:$4 sm:$0xff]  }
 0x10c   : > { %1777 = vmatprep.subr.bf16.mxu1 %v3182_v38  ;;  %2301 = vmatpush1.bf16.msra.mxu0 %v3267_v49  ;;  %v3297_v38 = vld [vmem:[#allocation8 + $0xe0] ss:$8 sps:$4 sm:$0xff]  }
 0x10d   : > { %2302 = vmatprep.subr.bf16.mxu0 %v3272_v51  ;;  %v3243_v49 = vld [vmem:[#allocation6 + $0x5a8] ss:$16 sps:$4 sm:$0xff]  }
 0x10e   : > { %v3246_v51 = vld [vmem:[#allocation6 + $0x5c8] ss:$16 sps:$4 sm:$0xff]  }
 0x10f   : > { %1778 = vmatpush1.bf16.msra.mxu1 %v3180_v40  ;;  %v3302_v40 = vld [vmem:[#allocation8 + $0xf4] ss:$8 sps:$4 sm:$0xff]  }
 0x110   : > { %1779 = vmatprep.subr.bf16.mxu1 %v3185_v42  ;;  %2303 = vmatpush1.bf16.msra.mxu0 %v3270_v54  ;;  %v3300_v42 = vld [vmem:[#allocation8 + $0xf0] ss:$8 sps:$4 sm:$0xff]  }
 0x111   : > { %2304 = vmatprep.subr.bf16.mxu0 %v3275_v56  ;;  %v3249_v54 = vld [vmem:[#allocation6 + $0x5e8] ss:$16 sps:$4 sm:$0xff]  }
 0x112   : > { %v3252_v56 = vld [vmem:[#allocation6 + $0x608] ss:$16 sps:$4 sm:$0xff]  }
 0x113   : > { %1780 = vmatpush1.bf16.msra.mxu1 %v3183_v44  ;;  %v3237_v44 = vld [vmem:[#allocation6 + $0x568] ss:$16 sps:$4 sm:$0xff]  }
 0x114   : > { %1781 = vmatprep.subr.bf16.mxu1 %v3188_v46  ;;  %2305 = vmatpush1.bf16.msra.mxu0 %v3273_v58  ;;  %v3305_v46 = vld [vmem:[#allocation8 + $0x104] ss:$8 sps:$4 sm:$0xff]  }
 0x115   : > { %2306 = vmatprep.subr.bf16.mxu0 %v3278_v60 }
 0x117   : > { %1782 = vmatpush1.bf16.msra.mxu1 %v3186_v48  ;;  %v3245_v48 = vld [vmem:[#allocation6 + $0x5ac] ss:$16 sps:$4 sm:$0xff]  }
 0x118   : > { %1783 = vmatprep.subr.bf16.mxu1 %v3191_v50  ;;  %2307 = vmatpush1.bf16.msra.mxu0 %v3276_v62  ;;  %v3248_v50 = vld [vmem:[#allocation6 + $0x5cc] ss:$16 sps:$4 sm:$0xff]  }
 0x119   : > { %2308 = vmatprep.subr.bf16.mxu0 %v3281_v0 }
 0x11b   : > { %1784 = vmatpush1.bf16.msra.mxu1 %v3189_v52  ;;  %v3251_v52 = vld [vmem:[#allocation6 + $0x5ec] ss:$16 sps:$4 sm:$0xff]  }
 0x11c   : > { %1785 = vmatprep.subr.bf16.mxu1 %v3194_v55  ;;  %2309 = vmatpush1.bf16.msra.mxu0 %v3279_v2  ;;  %v3254_v55 = vld [vmem:[#allocation6 + $0x60c] ss:$16 sps:$4 sm:$0xff]  }
 0x11d   : > { %2310 = vmatprep.subr.bf16.mxu0 %v3284_v4 }
 0x11f   : > { %1786 = vmatpush1.bf16.msra.mxu1 %v3192_v57 }
 0x120   : > { %1787 = vmatprep.subr.bf16.mxu1 %v3197_v59  ;;  %2311 = vmatpush1.bf16.msra.mxu0 %v3282_v6 }
 0x121   : > { %2312 = vmatprep.subr.bf16.mxu0 %v3287_v10 }
 0x123   : > { %1788 = vmatpush1.bf16.msra.mxu1 %v3195_v61  ;;  %v528_v61 = vlaneseq }
 0x124   : > { %1789 = vmatprep.subr.bf16.mxu1 %v3200_v63  ;;  %2313 = vmatpush1.bf16.msra.mxu0 %v3285_v13 }
 0x125   : > { %2314 = vmatprep.subr.bf16.mxu0 %v3290_v14  ;;  %v3792_v62 = vshrl.u32 %v528_v61, 7 }
 0x127   : > { %1790 = vmatpush1.bf16.msra.mxu1 %v3198_v1  ;;  %v3795_v63 = vsub.s32 0, %v3792_v62 }
 0x128   : > { %1791 = vmatprep.subr.bf16.mxu1 %v3203_v3  ;;  %2315 = vmatpush1.bf16.msra.mxu0 %v3288_v18 }
 0x129   : > { %2316 = vmatprep.subr.bf16.mxu0 %v3293_v20  ;;  %v3308_v20 = vld [vmem:[#allocation8 + $0x114] ss:$8 sps:$4 sm:$0xff]  }
 0x12b   : > { %1792 = vmatpush1.bf16.msra.mxu1 %v3201_v5 }
 0x12c   : > { %1802 = vmatprep.subr.bf16.mxu1 %v3206_v7  ;;  %2317 = vmatpush1.bf16.msra.mxu0 %v3291_v23  ;;  %v3309_v23 = vld [vmem:[#allocation8 + $0x120] ss:$8 sps:$4 sm:$0xff]  }
 0x12d   : > { %2318 = vmatprep.subr.bf16.mxu0 %v3296_v24  ;;  %v3314_v24 = vld [vmem:[#allocation8 + $0x134] ss:$8 sps:$4 sm:$0xff]  }
 0x12e   : > { %1794 = vmatmul.mubr.bf16.vlgmr.msra.gmra.mrb[4].mxu1 %v3760_v9  ;;  %v3213_v9 = vld [vmem:[#allocation6 + $0x468] ss:$16 sps:$4 sm:$0xff]  }
 0x12f   : > { %1803 = vmatpush1.bf16.msra.mxu1 %v3204_v11  ;;  %1834 = vmatprep.mubr.bf16.mxu1 %v3770_v37  ;;  %v3294_v37 = vld [vmem:[#allocation8 + $0xd0] ss:$8 sps:$4 sm:$0xff]  }
 0x130   : > { %1804 = vmatprep.subr.bf16.mxu1 %v3209_v12  ;;  %2319 = vmatpush1.bf16.msra.mxu0 %v3294_v37  ;;  %v3315_v37 = vld [vmem:[#allocation8 + $0x140] ss:$8 sps:$4 sm:$0xff]  }
 0x131   : > { %2320 = vmatprep.subr.bf16.mxu0 %v3299_v35  ;;  %v3335_v35 = vld [vmem:[#allocation8 + $0x1a4] ss:$8 sps:$4 sm:$0xff]  }
 0x133   : > { %1805 = vmatpush1.bf16.msra.mxu1 %v3207_v15 }
 0x134   : > { %1806 = vmatprep.subr.bf16.mxu1 %v3212_v17  ;;  %2321 = vmatpush1.bf16.msra.mxu0 %v3297_v38  ;;  %v3303_v17 = vld [vmem:[#allocation8 + $0x100] ss:$8 sps:$4 sm:$0xff]   ;;  %v3338_v38 = vld [vmem:[#allocation8 + $0x1b4] ss:$8 sps:$4 sm:$0xff]  }
 0x135   : > { %2322 = vmatprep.subr.bf16.mxu0 %v3302_v40  ;;  %v3341_v40 = vld [vmem:[#allocation8 + $0x1c4] ss:$8 sps:$4 sm:$0xff]  }
 0x137   : > { %1807 = vmatpush1.bf16.msra.mxu1 %v3210_v21  ;;  %v3306_v21 = vld [vmem:[#allocation8 + $0x110] ss:$8 sps:$4 sm:$0xff]  }
 0x138   : > { %1808 = vmatprep.subr.bf16.mxu1 %v3215_v22  ;;  %2323 = vmatpush1.bf16.msra.mxu0 %v3300_v42  ;;  %v3311_v22 = vld [vmem:[#allocation8 + $0x124] ss:$8 sps:$4 sm:$0xff]   ;;  %v3344_v42 = vld [vmem:[#allocation8 + $0x1d4] ss:$8 sps:$4 sm:$0xff]  }
 0x139   : > { %2333 = vmatprep.subr.bf16.mxu0 %v3305_v46  ;;  %v3350_v46 = vld [vmem:[#allocation8 + $0x1f4] ss:$8 sps:$4 sm:$0xff]  }
 0x13b   : > { %1809 = vmatpush1.bf16.msra.mxu1 %v3213_v9  ;;  %v3312_v9 = vld [vmem:[#allocation8 + $0x130] ss:$8 sps:$4 sm:$0xff]  }
 0x13c   : > { %1810 = vmatprep.subr.bf16.mxu1 %v3218_v26  ;;  %v3317_v26 = vld [vmem:[#allocation8 + $0x144] ss:$8 sps:$4 sm:$0xff]  }
 0x13f   : > { %1811 = vmatpush1.bf16.msra.mxu1 %v3216_v27  ;;  %v3320_v27 = vld [vmem:[#allocation8 + $0x154] ss:$8 sps:$4 sm:$0xff]  }
 0x140   : > { %1812 = vmatprep.subr.bf16.mxu1 %v3221_v8  ;;  %v3318_v8 = vld [vmem:[#allocation8 + $0x150] ss:$8 sps:$4 sm:$0xff]  }
 0x143   : > { %1813 = vmatpush1.bf16.msra.mxu1 %v3219_v28  ;;  %v3323_v28 = vld [vmem:[#allocation8 + $0x164] ss:$8 sps:$4 sm:$0xff]  }
 0x144   : > { %1814 = vmatprep.subr.bf16.mxu1 %v3224_v29  ;;  %v3321_v29 = vld [vmem:[#allocation8 + $0x160] ss:$8 sps:$4 sm:$0xff]  }
 0x147   : > { %1815 = vmatpush1.bf16.msra.mxu1 %v3222_v30  ;;  %v3326_v30 = vld [vmem:[#allocation8 + $0x174] ss:$8 sps:$4 sm:$0xff]  }
 0x148   : > { %1816 = vmatprep.subr.bf16.mxu1 %v3227_v53  ;;  %v3324_v53 = vld [vmem:[#allocation8 + $0x170] ss:$8 sps:$4 sm:$0xff]  }
 0x14b   : > { %1817 = vmatpush1.bf16.msra.mxu1 %v3225_v31  ;;  %v3329_v31 = vld [vmem:[#allocation8 + $0x184] ss:$8 sps:$4 sm:$0xff]  }
 0x14c   : > { %1818 = vmatprep.subr.bf16.mxu1 %v3230_v32  ;;  %v3327_v32 = vld [vmem:[#allocation8 + $0x180] ss:$8 sps:$4 sm:$0xff]  }
 0x14f   : > { %1819 = vmatpush1.bf16.msra.mxu1 %v3228_v33  ;;  %v3332_v33 = vld [vmem:[#allocation8 + $0x194] ss:$8 sps:$4 sm:$0xff]  }
 0x150   : > { %1820 = vmatprep.subr.bf16.mxu1 %v3233_v34  ;;  %v3330_v34 = vld [vmem:[#allocation8 + $0x190] ss:$8 sps:$4 sm:$0xff]  }
 0x153   : > { %1821 = vmatpush1.bf16.msra.mxu1 %v3231_v36  ;;  %v3333_v36 = vld [vmem:[#allocation8 + $0x1a0] ss:$8 sps:$4 sm:$0xff]  }
 0x154   : > { %1822 = vmatprep.subr.bf16.mxu1 %v3236_v39  ;;  %v3336_v39 = vld [vmem:[#allocation8 + $0x1b0] ss:$8 sps:$4 sm:$0xff]  }
 0x157   : > { %1823 = vmatpush1.bf16.msra.mxu1 %v3234_v41  ;;  %v3339_v41 = vld [vmem:[#allocation8 + $0x1c0] ss:$8 sps:$4 sm:$0xff]  }
 0x158   : > { %1824 = vmatprep.subr.bf16.mxu1 %v3239_v43  ;;  %v3342_v43 = vld [vmem:[#allocation8 + $0x1d0] ss:$8 sps:$4 sm:$0xff]  }
 0x15b   : > { %1825 = vmatpush1.bf16.msra.mxu1 %v3237_v44  ;;  %v3347_v44 = vld [vmem:[#allocation8 + $0x1e4] ss:$8 sps:$4 sm:$0xff]  }
 0x15c   : > { %1826 = vmatprep.subr.bf16.mxu1 %v3242_v45  ;;  %v3345_v45 = vld [vmem:[#allocation8 + $0x1e0] ss:$8 sps:$4 sm:$0xff]  }
 0x15f   : > { %1827 = vmatpush1.bf16.msra.mxu1 %v3240_v47  ;;  %v3348_v47 = vld [vmem:[#allocation8 + $0x1f0] ss:$8 sps:$4 sm:$0xff]  }
 0x160   : > { %1828 = vmatprep.subr.bf16.mxu1 %v3245_v48  ;;  %v538_v48 = vsub.s32 2, %v3792_v62 }
 0x163   : > { %1829 = vmatpush1.bf16.msra.mxu1 %v3243_v49  ;;  %v542_v49 = vsub.s32 3, %v3792_v62 }
 0x164   : > { %1830 = vmatprep.subr.bf16.mxu1 %v3248_v50 }
 0x167   : > { %1831 = vmatpush1.bf16.msra.mxu1 %v3246_v51 }
 0x168   : > { %1832 = vmatprep.subr.bf16.mxu1 %v3251_v52 }
 0x16b   : > { %1833 = vmatpush1.bf16.msra.mxu1 %v3249_v54 }
 0x16c   : > { %1843 = vmatprep.subr.bf16.mxu1 %v3254_v55 }
 0x16e   : > { %1835 = vmatmul.mubr.bf16.vlgmr.msra.gmra.mrb[4].mxu1 %v3775_v16  ;;  %v3800_v16 = vld [vmem:[%s3874_s2] sm:$0xf] }
 0x16f   : > { %1844 = vmatpush1.bf16.msra.mxu1 %v3252_v56  ;;  %1875 = vmatprep.mubr.bf16.mxu1 %v3520_v19  ;;  %v534_v19 = vsub.s32 1, %v3792_v62  ;;  %v539_v50 = vrot.slane %v3800_v16, %v538_v48  ;;  %v543_v51 = vrot.slane %v3800_v16, %v542_v49 }
 0x171   : > { %v535_v0 = vrot.slane %v3800_v16, %v534_v19 }
 0x17a   : > { %2775 = vmatmul.mubr.msk.bf16.vlgmr.msra.gmra.mrb[4].mxu1 %vm1552_vm0, %v3782_v25  ;;  %v531_v25 = vrot.slane %v3800_v16, %v3795_v63  ;;  %v2840_v16 = vld.sshfl [vmem:[%s3877_s5] sm:$0x11 pattern:$0x75316420] }
 0x181   : > { %v1590_v57 = vpop.f32.mrb[0].mxu1 }
 0x182   : > { %v1592_v58 = vpop.f32.mrb[1].mxu1  ;;  %v1591_v1 = vadd.f32 %v1590_v57, %v531_v25 }
 0x183   : > { %v1594_v59 = vpop.f32.mrb[2].mxu1  ;;  %v1593_v2 = vadd.f32 %v1592_v58, %v535_v0 }
 0x184   : > { %v1595_v60 = vpop.f32.mrb[3].mxu1 }
 0x1ce   : > { %v1713_v3 = vpop.f32.mrb[0].mxu0 }
 0x1cf   : > { %v2846_v4 = vadd.f32 %v1713_v3, %v1591_v1  ;;  %v1715_v5 = vpop.f32.mrb[1].mxu0 }
 0x1d0   : > { %v2848_v6 = vadd.f32 %v1715_v5, %v1593_v2  ;;  %v1717_v7 = vpop.f32.mrb[2].mxu0  ;;  %v3521_v2 = vmov 1966171168   ;;  %v2399_v5 = vcombine.high %v2840_v16, %v2840_v16 }
 0x1d1   : > { %v1884_v10 = vmul.f32 0.2, %v2846_v4  ;;  %v1718_v11 = vpop.f32.mrb[3].mxu0  ;;  %v2401_v3 = vunpack.c.l.s4 %v3521_v2 }
 0x1d2   : > { %v1885_v12 = vmul.f32 0.2, %v2848_v6  ;;  %v2381_v11 = vld [vmem:[#allocation2] sm:$0x1] }
 0x1d3   : > { %v1888_v13 = vmax.f32 %v2846_v4, %v1884_v10  ;;  %v2402_v4 = vunpack.c.0.s8 %v2401_v3  ;;  %2384 = vperm.xlu0 %2953, %v2381_v11  }
 0x1d4   : > { %v1889_v14 = vmax.f32 %v2848_v6, %v1885_v12  ;;  %v1960_v12 = vld [vmem:[%s3876_s4] sm:$0x3] }
 0x1d5   : > { %v1892_v18 = vpack.c.bf16 %v1888_v13, %v1888_v13  ;;  %v2405_v6 = vsub.s32 %v2402_v4, %v3792_v62  ;;  %v1965_v13 = vrot.slane %v1960_v12, %v3795_v63 }
 0x1d6   : > { %v1893_v15 = vpack.c.bf16 %v1889_v14, %v1889_v14  ;;  %v1969_v14 = vrot.slane %v1960_v12, %v534_v19 }
 0x1d7   : > { %v2413_v7 = vrot.slane %v2399_v5, %v2405_v6  ;;  %v2406_v10 = vrot.slane %v2840_v16, %v2405_v6 }
 0x1d8   : > { %2324 = vmatprep.mubr.bf16.mxu0 %v1893_v15 }
 0x1d9   : > { %2325 = vmatmul.mubr.bf16.vlgmr.msra.gmra.mrb[4].mxu0 %v1892_v18  ;;  %2448 = vmatprep.mubr.bf16.mxu1 %v2413_v7 }
 0x1da   : > { %2334 = vmatpush1.bf16.msra.mxu0 %v3303_v17 }
 0x1db   : > { %2335 = vmatprep.subr.bf16.mxu0 %v3308_v20 }
 0x1de   : > { %2336 = vmatpush1.bf16.msra.mxu0 %v3306_v21 }
 0x1df   : > { %2337 = vmatprep.subr.bf16.mxu0 %v3311_v22 }
 0x1e2   : > { %2338 = vmatpush1.bf16.msra.mxu0 %v3309_v23 }
 0x1e3   : > { %2339 = vmatprep.subr.bf16.mxu0 %v3314_v24 }
 0x1e6   : > { %2340 = vmatpush1.bf16.msra.mxu0 %v3312_v9 }
 0x1e7   : > { %2341 = vmatprep.subr.bf16.mxu0 %v3317_v26 }
 0x1ea   : > { %2342 = vmatpush1.bf16.msra.mxu0 %v3315_v37 }
 0x1eb   : > { %2343 = vmatprep.subr.bf16.mxu0 %v3320_v27 }
 0x1ee   : > { %2344 = vmatpush1.bf16.msra.mxu0 %v3318_v8 }
 0x1ef   : > { %2345 = vmatprep.subr.bf16.mxu0 %v3323_v28 }
 0x1f2   : > { %2346 = vmatpush1.bf16.msra.mxu0 %v3321_v29 }
 0x1f3   : > { %2347 = vmatprep.subr.bf16.mxu0 %v3326_v30 }
 0x1f6   : > { %2348 = vmatpush1.bf16.msra.mxu0 %v3324_v53 }
 0x1f7   : > { %2349 = vmatprep.subr.bf16.mxu0 %v3329_v31 }
 0x1fa   : > { %2350 = vmatpush1.bf16.msra.mxu0 %v3327_v32 }
 0x1fb   : > { %2351 = vmatprep.subr.bf16.mxu0 %v3332_v33 }
 0x1fe   : > { %2352 = vmatpush1.bf16.msra.mxu0 %v3330_v34 }
 0x1ff   : > { %2353 = vmatprep.subr.bf16.mxu0 %v3335_v35 }
 0x202   : > { %2354 = vmatpush1.bf16.msra.mxu0 %v3333_v36 }
 0x203   : > { %2355 = vmatprep.subr.bf16.mxu0 %v3338_v38 }
 0x206   : > { %2356 = vmatpush1.bf16.msra.mxu0 %v3336_v39 }
 0x207   : > { %2357 = vmatprep.subr.bf16.mxu0 %v3341_v40 }
 0x20a   : > { %2358 = vmatpush1.bf16.msra.mxu0 %v3339_v41 }
 0x20b   : > { %2359 = vmatprep.subr.bf16.mxu0 %v3344_v42 }
 0x20e   : > { %2360 = vmatpush1.bf16.msra.mxu0 %v3342_v43 }
 0x20f   : > { %2361 = vmatprep.subr.bf16.mxu0 %v3347_v44 }
 0x212   : > { %2362 = vmatpush1.bf16.msra.mxu0 %v3345_v45 }
 0x213   : > { %2363 = vmatprep.subr.bf16.mxu0 %v3350_v46 }
 0x216   : > { %2364 = vmatpush1.bf16.msra.mxu0 %v3348_v47 }
 0x24d   : > { %v1877_v52 = vpop.f32.mrb[4].mxu1 }
 0x24e   : > { %v2849_v54 = vadd.f32 %v1877_v52, %v539_v50  ;;  %v1879_v55 = vpop.f32.mrb[5].mxu1 }
 0x24f   : > { %v2850_v56 = vadd.f32 %v1879_v55, %v543_v51  ;;  %v1881_v57 = vpop.f32.mrb[6].mxu1 }
 0x250   : > { %v1886_v58 = vmul.f32 0.2, %v2849_v54  ;;  %v1882_v59 = vpop.f32.mrb[7].mxu1 }
 0x251   : > { %v1887_v60 = vmul.f32 0.2, %v2850_v56 }
 0x252   : > { %v1890_v61 = vmax.f32 %v2849_v54, %v1886_v58  ;;  %v2385_v8 = vpop.permute.xlu0 %2384 }
 0x253   : > { %v1891_v25 = vmax.f32 %v2850_v56, %v1887_v60  ;;  %v2390_v62 = vrot.slane %v2385_v8, %v3795_v63 }
 0x254   : > { %v1894_v1 = vpack.c.bf16 %v1890_v61, %v1890_v61 }
 0x255   : > { %v1895_v0 = vpack.c.bf16 %v1891_v25, %v1891_v25 }
 0x257   : > { %2365 = vmatprep.mubr.bf16.mxu0 %v1895_v0 }
 0x258   : > { %2366 = vmatmul.mubr.bf16.vlgmr.msra.gmra.mrb[4].mxu0 %v1894_v1 }
 0x32b   : > { %v2367_v15 = vpop.f32.mrb[4].mxu0 }
 0x32c   : > { %v2851_v17 = vadd.f32 %v2367_v15, %v1965_v13  ;;  %v2369_v18 = vpop.f32.mrb[5].mxu0 }
 0x32d   : > { %v2852_v20 = vadd.f32 %v2369_v18, %v1969_v14  ;;  %v2371_v21 = vpop.f32.mrb[6].mxu0 }
 0x32e   : > { %v2374_v22 = vmul.f32 0.2, %v2851_v17  ;;  %v2372_v23 = vpop.f32.mrb[7].mxu0 }
 0x32f   : > { %v2375_v24 = vmul.f32 0.2, %v2852_v20 }
 0x330   : > { %v2376_v9 = vmax.f32 %v2851_v17, %v2374_v22 }
 0x331   : > { %v2377_v26 = vmax.f32 %v2852_v20, %v2375_v24 }
 0x332   : > { %v2379_v27 = vpack.c.bf16 %v2376_v9, %v2376_v9 }
 0x333   : > { %v2380_v37 = vpack.c.bf16 %v2377_v26, %v2377_v26 }
 0x335   : > { %2416 = vmatprep.subr.bf16.mxu1 %v2380_v37 }
 0x336   : > { %2417 = vmatpush1.bf16.xpose.msra.mxu1 %v2379_v27 }
 0x33d   : > { %2449 = vmatmul.mubr.bf16.vlgmr.msra.gmra.mrb[8].mxu1 %v2406_v10 }
 0x410   : > { %v2450_v19 = vpop.f32.mrb[8].mxu1 }
 0x411   : > { %v2451_v28 = vadd.f32 %v2450_v19, %v2390_v62  ;;  %v2452_v29 = vpop.f32.mrb[9].mxu1 }
 0x412   : > { %v2453_v30 = vpop.f32.mrb[10].mxu1 }
 0x413   : > { %v2841_v53 = vmul.f32 -1.442695, %v2451_v28  ;;  %v2454_v31 = vpop.f32.mrb[11].mxu1 }
 0x415   : > { %3351 = vpow2.f32 %v2841_v53 }
 0x41f   : > { %v3352_v32 = vpop.eup %3351 }
 0x420   : > { %v2459_v33 = vadd.f32 1.0, %v3352_v32 }
 0x422   : > { %3353 = vrcp.f32 %v2459_v33 }
 0x42c   : > { %v3354_v63 = vpop.eup %3353 }
 0x42d   : > { %2463 = vst.msk [vmem:[%s324_s13] sm:$0x1] %vm2462_vm1, %v3354_v63 }
 0x42e   : > { %3454 = shalt.err (!%p3451_p2)
}
 0x42f   : > { %s3455_s25 = scalar_lea.hbm %s3828_s14, 16  ;;  %s3459_s23 = scalar_lea.hbm %s3879_s7, 32 }
 0x430   : > { %p3456_p13 = scmp.ne.s32.totalorder %s3828_s14, %s3455_s25  ;;  %p3460_p4 = scmp.lt.u32.totalorder %s3828_s14, %s3879_s7 }
 0x431   : > { %p3461_p7 = scmp.lt.u32.totalorder %s3459_s23, %s3455_s25  ;;  %p3463_p11 = scmp.lt.u32.totalorder %s3455_s25, %s3828_s14 }
 0x432   : > { %p3457_p6 = pnand %p3456_p13, %p3893_p0 }
 0x433   : > { %p3462_p8 = por %p3461_p7, %p3460_p4 }
 0x434   : > { %p3458_p10 = pneg %p3457_p6 }
 0x435   : > { %p3464_p1 = por %p3463_p11, %p3462_p8 }
 0x437   : > { %p3465_p3 = pnand %p3464_p1, %p3458_p10 }
 0x439   : > { %3468 = shalt.err (!%p3465_p3)
}
 0x43a   : > { %2890 = dma.vmem_to_hbm [thread:$0]  (%p3893_p0), %s3830_s18, 16, %s3828_s14, %s2465_s15  }
 0x43b PF: > { %s2489_s13 = sand.u32 1, %s3499_s26   ;;  %p3894_p5 = scmp.ne.s32.totalorder %s3884_s9, 0 }
 0x43c   : > { %p3895_p9 = scmp.ge.s32.totalorder %s3511_s29, 2  ;;  %s2490_s22 = scalar_lea.sflag [#allocation5], %s2489_s13 }
 0x43e   : > { %p2904_p12 = pnand %p3895_p9, %p3894_p5 }
 0x440   : > { %3494 = dma.done.wait (!%p2904_p12), %s2490_s22, 16  }
 0x441   : > { %3496 = vsyncadd (!%p2904_p12), %s2490_s22, 4294967280  ;;  %p23_p2 = scmp.ge.s32.totalorder %s3676_s30, 4   ;;  %s3896_s26 = smov %s3503_s27 }
 0x442   : > { %s3897_s27 = smov %s3507_s28  ;;  %s3898_s28 = smov %s3685_s16 }
 0x443   : > { %s3899_s29 = smov %s3676_s30  ;;  %25 = sbr.rel (!%p23_p2) target bundleno = 9 (0x9), region = 101 }
 0x44a   :  { %2494 = vsyncpa [#allocation4], 1 }
 0x44b   :  { %2496 = vsyncpa [#allocation4 + $0x1], 1 }
 0x44c   :  { %2497 = vsyncpa [#allocation7], 1 }
 0x44d   :  { %2498 = vsyncpa [#allocation5], 1 }
 0x44e   :  { %2500 = vsyncpa [#allocation5 + $0x1], 1 }

</bundles_post_ra>
